<compile_context>
chip_gen: v7x
topology: tpu7x:2x2x1
jax: 0.10.0
libtpu: 0.0.40
codegen_flags: <defaults>
</compile_context>

<pallas_src>
import functools

import jax
import jax.numpy as jnp
import numpy as np
from jax.experimental import pallas as pl
from jax.experimental.pallas import tpu as pltpu

LOG_STD_MIN = -5.0
LOG_STD_MAX = 2.0
_LS_SCALE = 0.5 * (LOG_STD_MAX - LOG_STD_MIN)   # 3.5
_LS_SHIFT = 0.5 * (LOG_STD_MAX + LOG_STD_MIN)   # -1.5


def sac_actor_kernel(x_ref, w1_ref, b1_ref, w2_ref, b2_ref, wh_ref, bh_ref,
                     out_ref, *, act_dim):
    # fc1 + ReLU : bf16 operands -> f32 accumulate, epilogue in f32, downcast for next dot
    h1 = jnp.dot(x_ref[...], w1_ref[...], preferred_element_type=jnp.float32) + b1_ref[...]
    h1 = jnp.maximum(h1, 0.0).astype(jnp.bfloat16)
    # fc2 + ReLU
    h2 = jnp.dot(h1, w2_ref[...], preferred_element_type=jnp.float32) + b2_ref[...]
    h2 = jnp.maximum(h2, 0.0).astype(jnp.bfloat16)
    # fused heads: columns [0:act) = mean, [act:2*act) = log_std, rest zero-padded to 128 lanes
    y = jnp.dot(h2, wh_ref[...], preferred_element_type=jnp.float32) + bh_ref[...]
    # tanh squash of log_std folded to one FMA: LOG_STD_MIN + 0.5*(MAX-MIN)*(tanh(y)+1)
    squashed = _LS_SCALE * jnp.tanh(y) + _LS_SHIFT
    col = jax.lax.broadcasted_iota(jnp.int32, y.shape, 1)
    is_logstd = jnp.logical_and(col >= act_dim, col < 2 * act_dim)
    out_ref[...] = jnp.where(is_logstd, squashed, y).astype(out_ref.dtype)


def sac_actor_forward(x, params, *, batch_tile=256):
    """x: [B, obs_dim] float32. params: transposed weights [in,out] and biases [1,out]."""
    B, obs_dim = x.shape
    hidden = params["w1"].shape[1]
    act_dim = params["wm"].shape[1]

    # Fused, lane-padded head (built once per call on the host/XLA side).
    head_pad = max(128, ((2 * act_dim + 127) // 128) * 128)
    wh = jnp.zeros((hidden, head_pad), jnp.float32)
    wh = wh.at[:, :act_dim].set(params["wm"]).at[:, act_dim:2 * act_dim].set(params["wl"])
    bh = jnp.zeros((1, head_pad), jnp.float32)
    bh = bh.at[:, :act_dim].set(params["bm"]).at[:, act_dim:2 * act_dim].set(params["bl"])

    # bf16 operands for the MXU; biases stay f32 (f32 epilogue).
    tb = batch_tile
    B_pad = ((B + tb - 1) // tb) * tb
    x_p = jnp.pad(x, ((0, B_pad - B), (0, 0))).astype(jnp.bfloat16)
    w1 = params["w1"].astype(jnp.bfloat16)
    w2 = params["w2"].astype(jnp.bfloat16)
    wh = wh.astype(jnp.bfloat16)
    b1, b2 = params["b1"], params["b2"]

    grid = (B_pad // tb,)
    const = lambda arr: pl.BlockSpec(arr.shape, lambda i: (0,) * arr.ndim)  # resident in VMEM

    out = pl.pallas_call(
        functools.partial(sac_actor_kernel, act_dim=act_dim),
        out_shape=jax.ShapeDtypeStruct((B_pad, head_pad), jnp.float32),
        grid=grid,
        in_specs=[
            pl.BlockSpec((tb, obs_dim), lambda i: (i, 0)),   # x: tiled over batch
            const(w1), const(b1),
            const(w2), const(b2),
            const(wh), const(bh),
        ],
        out_specs=pl.BlockSpec((tb, head_pad), lambda i: (i, 0)),
        compiler_params=pltpu.CompilerParams(dimension_semantics=("parallel",)),
    )(x_p, w1, b1, w2, b2, wh, bh)

    mean = out[:B, :act_dim]
    log_std = out[:B, act_dim:2 * act_dim]
    return mean, log_std


def init_params(key, obs_dim, act_dim, hidden=256):
    """Deterministic init matching PyTorch nn.Linear default: U(-1/sqrt(fan_in), +1/sqrt(fan_in))."""
    ks = jax.random.split(key, 8)

    def linear(kw, kb, fan_in, fan_out):
        bound = 1.0 / np.sqrt(fan_in)
        w = jax.random.uniform(kw, (fan_in, fan_out), jnp.float32, -bound, bound)
        b = jax.random.uniform(kb, (1, fan_out), jnp.float32, -bound, bound)
        return w, b

    w1, b1 = linear(ks[0], ks[1], obs_dim, hidden)
    w2, b2 = linear(ks[2], ks[3], hidden, hidden)
    wm, bm = linear(ks[4], ks[5], hidden, act_dim)
    wl, bl = linear(ks[6], ks[7], hidden, act_dim)
    return {"w1": w1, "b1": b1, "w2": w2, "b2": b2,
            "wm": wm, "bm": bm, "wl": wl, "bl": bl}


def reference_forward(x, p):
    """Pure-JAX f32 reference matching the PyTorch module's forward()."""
    h1 = jnp.maximum(x @ p["w1"] + p["b1"], 0.0)
    h2 = jnp.maximum(h1 @ p["w2"] + p["b2"], 0.0)
    mean = h2 @ p["wm"] + p["bm"]
    log_std = jnp.tanh(h2 @ p["wl"] + p["bl"])
    log_std = LOG_STD_MIN + 0.5 * (LOG_STD_MAX - LOG_STD_MIN) * (log_std + 1.0)
    return mean, log_std


if __name__ == "__main__":
    key = jax.random.PRNGKey(0)
    k_x, k_p = jax.random.split(key)

    batch, obs_dim, act_dim = 2, 16, 4
    x = jax.random.normal(k_x, (batch, obs_dim), jnp.float32)
    params = init_params(k_p, obs_dim, act_dim)

    mean, log_std = sac_actor_forward(x, params)
    jax.block_until_ready((mean, log_std))

    mean_ref, log_std_ref = reference_forward(x, params)
    # bf16 operands (f32 accumulation) -> loosened tolerance vs the pure-f32 reference.
    assert mean.shape == (batch, act_dim) and log_std.shape == (batch, act_dim)
    assert np.allclose(np.asarray(mean), np.asarray(mean_ref), atol=5e-2, rtol=5e-2)
    assert np.allclose(np.asarray(log_std), np.asarray(log_std_ref), atol=5e-2, rtol=5e-2)
    assert np.all(np.asarray(log_std) >= LOG_STD_MIN - 1e-3)
    assert np.all(np.asarray(log_std) <= LOG_STD_MAX + 1e-3)
    # TODO(synk): get_action's Normal.rsample + tanh/action_scale/log_prob (random sampling)
    # is left to the host/JAX side; only the deterministic forward (mean, log_std) is in-kernel.
    print("KERNEL_OK")
</pallas_src>

<mosaic_0001>
module attributes {stable_mosaic.version = 11 : i64} {
  func.func @sac_actor_kernel(%arg0: i32, %arg1: memref<256x16xbf16, #tpu.memory_space<vmem>>, %arg2: memref<16x256xbf16, #tpu.memory_space<vmem>>, %arg3: memref<1x256xf32, #tpu.memory_space<vmem>>, %arg4: memref<256x256xbf16, #tpu.memory_space<vmem>>, %arg5: memref<1x256xf32, #tpu.memory_space<vmem>>, %arg6: memref<256x128xbf16, #tpu.memory_space<vmem>>, %arg7: memref<1x128xf32, #tpu.memory_space<vmem>>, %arg8: memref<256x128xf32, #tpu.memory_space<vmem>>) attributes {dimension_semantics = [#tpu.dimension_semantics<parallel>], iteration_bounds = array<i64: 1>, scalar_prefetch = 0 : i64, scratch_operands = 0 : i64, tpu.core_type = #tpu.core_type<tc>, window_params = [{transform_indices = @transform_0, window_bounds = array<i64: 256, 16>}, {pipeline_mode = #tpu.pipeline_mode<synchronous>, transform_indices = @transform_1, window_bounds = array<i64: 16, 256>}, {pipeline_mode = #tpu.pipeline_mode<synchronous>, transform_indices = @transform_2, window_bounds = array<i64: 1, 256>}, {pipeline_mode = #tpu.pipeline_mode<synchronous>, transform_indices = @transform_3, window_bounds = array<i64: 256, 256>}, {pipeline_mode = #tpu.pipeline_mode<synchronous>, transform_indices = @transform_4, window_bounds = array<i64: 1, 256>}, {pipeline_mode = #tpu.pipeline_mode<synchronous>, transform_indices = @transform_5, window_bounds = array<i64: 256, 128>}, {pipeline_mode = #tpu.pipeline_mode<synchronous>, transform_indices = @transform_6, window_bounds = array<i64: 1, 128>}, {transform_indices = @transform_7, window_bounds = array<i64: 256, 128>}]} {
    %c0 = arith.constant 0 : index
    %c0_0 = arith.constant 0 : index
    %0 = vector.load %arg1[%c0, %c0_0] : memref<256x16xbf16, #tpu.memory_space<vmem>>, vector<256x16xbf16>
    %c0_1 = arith.constant 0 : index
    %c0_2 = arith.constant 0 : index
    %1 = vector.load %arg2[%c0_1, %c0_2] : memref<16x256xbf16, #tpu.memory_space<vmem>>, vector<16x256xbf16>
    %cst = arith.constant dense<0.000000e+00> : vector<256x256xf32>
    %2 = tpu.matmul %0, %1, %cst {dimension_numbers = #tpu.dot_dimension_numbers<[1], [0], [0], [1], [0, 0, 1, 1], [], []>} : vector<256x16xbf16>, vector<16x256xbf16>, vector<256x256xf32> -> vector<256x256xf32>
    %c0_3 = arith.constant 0 : index
    %c0_4 = arith.constant 0 : index
    %3 = vector.load %arg3[%c0_3, %c0_4] : memref<1x256xf32, #tpu.memory_space<vmem>>, vector<1x256xf32>
    %4 = vector.broadcast %3 : vector<1x256xf32> to vector<256x256xf32>
    %5 = arith.addf %2, %4 : vector<256x256xf32>
    %cst_5 = arith.constant 0.000000e+00 : f32
    %6 = vector.broadcast %cst_5 : f32 to vector<256x256xf32>
    %7 = arith.maximumf %5, %6 : vector<256x256xf32>
    %8 = arith.truncf %7 : vector<256x256xf32> to vector<256x256xbf16>
    %c0_6 = arith.constant 0 : index
    %c0_7 = arith.constant 0 : index
    %9 = vector.load %arg4[%c0_6, %c0_7] : memref<256x256xbf16, #tpu.memory_space<vmem>>, vector<256x256xbf16>
    %cst_8 = arith.constant dense<0.000000e+00> : vector<256x256xf32>
    %10 = tpu.matmul %8, %9, %cst_8 {dimension_numbers = #tpu.dot_dimension_numbers<[1], [0], [0], [1], [0, 0, 1, 1], [], []>} : vector<256x256xbf16>, vector<256x256xbf16>, vector<256x256xf32> -> vector<256x256xf32>
    %c0_9 = arith.constant 0 : index
    %c0_10 = arith.constant 0 : index
    %11 = vector.load %arg5[%c0_9, %c0_10] : memref<1x256xf32, #tpu.memory_space<vmem>>, vector<1x256xf32>
    %12 = vector.broadcast %11 : vector<1x256xf32> to vector<256x256xf32>
    %13 = arith.addf %10, %12 : vector<256x256xf32>
    %cst_11 = arith.constant 0.000000e+00 : f32
    %14 = vector.broadcast %cst_11 : f32 to vector<256x256xf32>
    %15 = arith.maximumf %13, %14 : vector<256x256xf32>
    %16 = arith.truncf %15 : vector<256x256xf32> to vector<256x256xbf16>
    %c0_12 = arith.constant 0 : index
    %c0_13 = arith.constant 0 : index
    %17 = vector.load %arg6[%c0_12, %c0_13] : memref<256x128xbf16, #tpu.memory_space<vmem>>, vector<256x128xbf16>
    %cst_14 = arith.constant dense<0.000000e+00> : vector<256x128xf32>
    %18 = tpu.matmul %16, %17, %cst_14 {dimension_numbers = #tpu.dot_dimension_numbers<[1], [0], [0], [1], [0, 0, 1, 1], [], []>} : vector<256x256xbf16>, vector<256x128xbf16>, vector<256x128xf32> -> vector<256x128xf32>
    %c0_15 = arith.constant 0 : index
    %c0_16 = arith.constant 0 : index
    %19 = vector.load %arg7[%c0_15, %c0_16] : memref<1x128xf32, #tpu.memory_space<vmem>>, vector<1x128xf32>
    %20 = vector.broadcast %19 : vector<1x128xf32> to vector<256x128xf32>
    %21 = arith.addf %18, %20 : vector<256x128xf32>
    %22 = math.tanh %21 : vector<256x128xf32>
    %cst_17 = arith.constant 3.500000e+00 : f32
    %23 = vector.broadcast %cst_17 : f32 to vector<256x128xf32>
    %24 = arith.mulf %23, %22 : vector<256x128xf32>
    %cst_18 = arith.constant -1.500000e+00 : f32
    %25 = vector.broadcast %cst_18 : f32 to vector<256x128xf32>
    %26 = arith.addf %24, %25 : vector<256x128xf32>
    %27 = tpu.iota {dimensions = array<i32: 1>} : vector<256x128xi32>
    %c4_i32 = arith.constant 4 : i32
    %28 = vector.broadcast %c4_i32 : i32 to vector<256x128xi32>
    %29 = arith.cmpi sge, %27, %28 : vector<256x128xi32>
    %c8_i32 = arith.constant 8 : i32
    %30 = vector.broadcast %c8_i32 : i32 to vector<256x128xi32>
    %31 = arith.cmpi slt, %27, %30 : vector<256x128xi32>
    %32 = arith.andi %29, %31 : vector<256x128xi1>
    %33 = arith.select %32, %26, %21 : vector<256x128xi1>, vector<256x128xf32>
    %c0_19 = arith.constant 0 : index
    %c0_20 = arith.constant 0 : index
    %34 = vector.load %arg8[%c0_19, %c0_20] : memref<256x128xf32, #tpu.memory_space<vmem>>, vector<256x128xf32>
    tpu.vector_store %arg8[%c0_19, %c0_20], %33 {strides = array<i32>} : memref<256x128xf32, #tpu.memory_space<vmem>>, vector<256x128xf32>,
    return
  }
  func.func @transform_0(%arg0: i32) -> (i32, i32) {
    %c0_i32 = arith.constant 0 : i32
    %c0_i32_0 = arith.constant 0 : i32
    return %arg0, %c0_i32 : i32, i32
  }
  func.func @transform_1(%arg0: i32) -> (i32, i32) {
    %c0_i32 = arith.constant 0 : i32
    %c0_i32_0 = arith.constant 0 : i32
    %c0_i32_1 = arith.constant 0 : i32
    return %c0_i32, %c0_i32_0 : i32, i32
  }
  func.func @transform_2(%arg0: i32) -> (i32, i32) {
    %c0_i32 = arith.constant 0 : i32
    %c0_i32_0 = arith.constant 0 : i32
    %c0_i32_1 = arith.constant 0 : i32
    return %c0_i32, %c0_i32_0 : i32, i32
  }
  func.func @transform_3(%arg0: i32) -> (i32, i32) {
    %c0_i32 = arith.constant 0 : i32
    %c0_i32_0 = arith.constant 0 : i32
    %c0_i32_1 = arith.constant 0 : i32
    return %c0_i32, %c0_i32_0 : i32, i32
  }
  func.func @transform_4(%arg0: i32) -> (i32, i32) {
    %c0_i32 = arith.constant 0 : i32
    %c0_i32_0 = arith.constant 0 : i32
    %c0_i32_1 = arith.constant 0 : i32
    return %c0_i32, %c0_i32_0 : i32, i32
  }
  func.func @transform_5(%arg0: i32) -> (i32, i32) {
    %c0_i32 = arith.constant 0 : i32
    %c0_i32_0 = arith.constant 0 : i32
    %c0_i32_1 = arith.constant 0 : i32
    return %c0_i32, %c0_i32_0 : i32, i32
  }
  func.func @transform_6(%arg0: i32) -> (i32, i32) {
    %c0_i32 = arith.constant 0 : i32
    %c0_i32_0 = arith.constant 0 : i32
    %c0_i32_1 = arith.constant 0 : i32
    return %c0_i32, %c0_i32_0 : i32, i32
  }
  func.func @transform_7(%arg0: i32) -> (i32, i32) {
    %c0_i32 = arith.constant 0 : i32
    %c0_i32_0 = arith.constant 0 : i32
    return %arg0, %c0_i32 : i32, i32
  }
}

</mosaic_0001>

<bundles_post_ra>
// kernel: tpu_custom_call.1
= control target key start
LH: loop header
LB: loop body
LE: loop exit
PB: predicated region body
PF: predicated region fallthrough
CT: control target
= control target key end

     0   :  { %12 = vsyncpa [#allocation3], 0  ;;  %s2387_s0 = inlined_call_operand.vmem [shape: bf16[256,16], index: 0, kind: input, shape index: {}]   ;;  %s2388_s1 = inlined_call_operand.vmem [shape: bf16[16,256], index: 1, kind: input, shape index: {}]   ;;  %s2389_s2 = inlined_call_operand.vmem [shape: f32[1,256], index: 2, kind: input, shape index: {}]   ;;  %s2390_s3 = inlined_call_operand.hbm [shape: bf16[256,256], index: 3, kind: input, shape index: {}]   ;;  %s2391_s4 = inlined_call_operand.vmem [shape: f32[1,256], index: 4, kind: input, shape index: {}]   ;;  %s2392_s5 = inlined_call_operand.vmem [shape: bf16[256,128], index: 5, kind: input, shape index: {}]   ;;  %s2393_s6 = inlined_call_operand.vmem [shape: f32[1,128], index: 6, kind: input, shape index: {}]   ;;  %s2394_s7 = inlined_call_operand.hbm [shape: f32[256,128], index: 7, kind: output, shape index: {}]  }
   0x1   :  { %13 = vsyncpa [#allocation4], 0  ;;  %s1884_s24 = smov [#allocation2]   ;;  %s1836_s28 = scalar_lea.hbm %s2390_s3, 4096 }
   0x2   :  { %s25_s25 = sshll.u32 %s1884_s24, 4  ;;  %p1837_p0 = scmp.ne.s32.totalorder %s2390_s3, %s1836_s28  ;;  %s26_s25 = int_to_ptr.vmem [resolvable:$true] %s25_s25 }
   0x3   :  { %p1840_p1 = scmp.lt.u32.totalorder %s1836_s28, %s2390_s3 }
   0x5   :  { %p1842_p2 = pnand %p1840_p1, %p1837_p0 }
   0x7   :  { %1845 = shalt.err (!%p1842_p2)
}
   0x8   :  { %s1846_s10 = scalar_lea.vmem %s26_s25, 4096  ;;  %p1851_p4 = scmp.lt.s32.totalorder %s26_s25, %s26_s25 }
   0x9   :  { %p1847_p3 = scmp.ne.s32.totalorder %s26_s25, %s1846_s10  ;;  %p1852_p5 = scmp.lt.s32.totalorder %s1846_s10, %s1846_s10 }
   0xb   :  { %p1853_p6 = por %p1852_p5, %p1851_p4 }
   0xd   :  { %p1854_p7 = pnand %p1853_p6, %p1847_p3 }
   0xf   :  { %1857 = shalt.err (!%p1854_p7)
}
  0x10   :  { %s1885_s11 = smov 128   ;;  %s1886_s12 = smov 8  }
  0x11   :  { %31 = dma.hbm_to_vmem [thread:$0]  %s2390_s3, 4096, %s26_s25, [#allocation3], %s1885_s11, %s1885_s11, %s1886_s12  }
  0x12   :  { %1880 = dma.done.wait [#allocation3], 4096  }
  0x13   :  { %1881 = vsyncadd [#allocation3], 4294963200  ;;  %v1887_v0 = vmov 0   ;;  %v1689_v1 = vld [vmem:[%s2388_s1 + $0x4] ss:$8 sps:$4 sm:$0xff]   ;;  %vm178_vm0 = vcmask 130048   ;;  %v78_v51 = vlaneseq }
  0x14   :  { %259 = vmatprep.mubr.bf16.mxu0 %v1887_v0  ;;  %339 = vmatprep.mubr.bf16.mxu1 %v1887_v0  ;;  %v1691_v2 = vld [vmem:[%s2388_s1] ss:$8 sps:$4 sm:$0xff]   ;;  %v1694_v7 = vld [vmem:[%s2387_s0 + $0x10] sm:$0xff]   ;;  %v1710_v9 = vld [vmem:[#allocation2 + $0x4] ss:$8 sps:$4 sm:$0xff]  }
  0x15   :  { %227 = vmatprep.subr.bf16.mxu0 %v1689_v1  ;;  %v1692_v3 = vld [vmem:[%s2387_s0] sm:$0xff]   ;;  %1682 = vmatprep.subr.bf16.mxu1 %v1689_v1  ;;  %v1693_v4 = vld [vmem:[%s2387_s0 + $0x8] sm:$0xff]   ;;  %v1713_v10 = vld [vmem:[#allocation2 + $0x14] ss:$8 sps:$4 sm:$0xff]   ;;  %v2031_v52 = vshrl.u32 %v78_v51, 7 }
  0x16   :  { %228 = vmatpush1.bf16.msra.mxu0 %v1691_v2  ;;  %1683 = vmatpush1.bf16.msra.mxu1 %v1691_v2  ;;  %v1700_v5 = vld [vmem:[%s2387_s0 + $0x40] sm:$0xff]   ;;  %v1701_v6 = vld [vmem:[%s2387_s0 + $0x48] sm:$0xff]   ;;  %v1711_v11 = vld [vmem:[#allocation2 + $0x10] ss:$8 sps:$4 sm:$0xff]  }
  0x17   :  { %v1708_v8 = vld [vmem:[#allocation2] ss:$8 sps:$4 sm:$0xff]   ;;  %720 = vmatprep.subr.bf16.mxu1 %v1710_v9  ;;  %v1716_v12 = vld [vmem:[#allocation2 + $0x24] ss:$8 sps:$4 sm:$0xff]   ;;  %v1702_v13 = vld [vmem:[%s2387_s0 + $0x50] sm:$0xff]   ;;  %v80_v53 = vsub.s32 0, %v2031_v52 }
  0x18   :  { %v1714_v14 = vld [vmem:[#allocation2 + $0x20] ss:$8 sps:$4 sm:$0xff]   ;;  %v1695_v15 = vld [vmem:[%s2387_s0 + $0x18] sm:$0xff]   ;;  %v1722_v18 = vld [vmem:[#allocation2 + $0x44] ss:$8 sps:$4 sm:$0xff]   ;;  %v84_v55 = vsub.s32 1, %v2031_v52 }
  0x19   :  { %1505 = vmatmul.mubr.msk.bf16.vlgmr.msra.gmra.mrb[0].mxu0 %vm178_vm0, %v1692_v3  ;;  %1513 = vmatmul.mubr.msk.bf16.vlgmr.msra.gmra.mrb[0].mxu1 %vm178_vm0, %v1700_v5  ;;  %v1719_v16 = vld [vmem:[#allocation2 + $0x34] ss:$8 sps:$4 sm:$0xff]   ;;  %v1717_v17 = vld [vmem:[#allocation2 + $0x30] ss:$8 sps:$4 sm:$0xff]   ;;  %v1720_v20 = vld [vmem:[#allocation2 + $0x40] ss:$8 sps:$4 sm:$0xff]  }
  0x1a   :  { %269 = vmatprep.mubr.bf16.mxu0 %v1887_v0  ;;  %349 = vmatprep.mubr.bf16.mxu1 %v1887_v0  ;;  %v1703_v19 = vld [vmem:[%s2387_s0 + $0x58] sm:$0xff]   ;;  %v1696_v21 = vld [vmem:[%s2387_s0 + $0x20] sm:$0xff]   ;;  %v1697_v27 = vld [vmem:[%s2387_s0 + $0x28] sm:$0xff]  }
  0x1b   :  { %721 = vmatpush1.bf16.msra.mxu1 %v1708_v8  ;;  %v1725_v22 = vld [vmem:[#allocation2 + $0x54] ss:$8 sps:$4 sm:$0xff]   ;;  %v1723_v23 = vld [vmem:[#allocation2 + $0x50] ss:$8 sps:$4 sm:$0xff]   ;;  %v1728_v24 = vld [vmem:[#allocation2 + $0x64] ss:$8 sps:$4 sm:$0xff]  }
  0x1c   :  { %722 = vmatprep.subr.bf16.mxu1 %v1713_v10  ;;  %v1704_v25 = vld [vmem:[%s2387_s0 + $0x60] sm:$0xff]   ;;  %v1731_v28 = vld [vmem:[#allocation2 + $0x74] ss:$8 sps:$4 sm:$0xff]   ;;  %v1729_v29 = vld [vmem:[#allocation2 + $0x70] ss:$8 sps:$4 sm:$0xff]  }
  0x1d   :  { %v1726_v26 = vld [vmem:[#allocation2 + $0x60] ss:$8 sps:$4 sm:$0xff]   ;;  %v1734_v30 = vld [vmem:[#allocation2 + $0x84] ss:$8 sps:$4 sm:$0xff]   ;;  %v1698_v33 = vld [vmem:[%s2387_s0 + $0x30] sm:$0xff]  }
  0x1e   :  { %v1705_v31 = vld [vmem:[%s2387_s0 + $0x68] sm:$0xff]   ;;  %v1737_v34 = vld [vmem:[#allocation2 + $0x94] ss:$8 sps:$4 sm:$0xff]   ;;  %v1735_v35 = vld [vmem:[#allocation2 + $0x90] ss:$8 sps:$4 sm:$0xff]  }
  0x1f   :  { %723 = vmatpush1.bf16.msra.mxu1 %v1711_v11  ;;  %v1732_v32 = vld [vmem:[#allocation2 + $0x80] ss:$8 sps:$4 sm:$0xff]   ;;  %v1740_v36 = vld [vmem:[#allocation2 + $0xa4] ss:$8 sps:$4 sm:$0xff]   ;;  %v1706_v37 = vld [vmem:[%s2387_s0 + $0x70] sm:$0xff]  }
  0x20   :  { %724 = vmatprep.subr.bf16.mxu1 %v1716_v12  ;;  %v1738_v38 = vld [vmem:[#allocation2 + $0xa0] ss:$8 sps:$4 sm:$0xff]   ;;  %v1699_v39 = vld [vmem:[%s2387_s0 + $0x38] sm:$0xff]   ;;  %v1746_v42 = vld [vmem:[#allocation2 + $0xc4] ss:$8 sps:$4 sm:$0xff]  }
  0x21   :  { %1506 = vmatmul.mubr.msk.bf16.gmra.mrb[4].mxu0 %vm178_vm0, %v1693_v4  ;;  %1514 = vmatmul.mubr.msk.bf16.gmra.mrb[4].mxu1 %vm178_vm0, %v1701_v6  ;;  %v1743_v40 = vld [vmem:[#allocation2 + $0xb4] ss:$8 sps:$4 sm:$0xff]   ;;  %v1741_v41 = vld [vmem:[#allocation2 + $0xb0] ss:$8 sps:$4 sm:$0xff]   ;;  %v1744_v44 = vld [vmem:[#allocation2 + $0xc0] ss:$8 sps:$4 sm:$0xff]  }
  0x22   :  { %279 = vmatprep.mubr.bf16.mxu0 %v1887_v0  ;;  %359 = vmatprep.mubr.bf16.mxu1 %v1887_v0  ;;  %v1707_v43 = vld [vmem:[%s2387_s0 + $0x78] sm:$0xff]   ;;  %v1752_v47 = vld [vmem:[#allocation2 + $0xe4] ss:$8 sps:$4 sm:$0xff]   ;;  %v1750_v48 = vld [vmem:[#allocation2 + $0xe0] ss:$8 sps:$4 sm:$0xff]  }
  0x23   :  { %725 = vmatpush1.bf16.msra.mxu1 %v1714_v14  ;;  %v1749_v45 = vld [vmem:[#allocation2 + $0xd4] ss:$8 sps:$4 sm:$0xff]   ;;  %v1747_v46 = vld [vmem:[#allocation2 + $0xd0] ss:$8 sps:$4 sm:$0xff]   ;;  %v76_v54 = vld [vmem:[%s2389_s2] sm:$0x3] }
  0x24   :  { %726 = vmatprep.subr.bf16.mxu1 %v1719_v16  ;;  %v1755_v49 = vld [vmem:[#allocation2 + $0xf4] ss:$8 sps:$4 sm:$0xff]   ;;  %v1753_v50 = vld [vmem:[#allocation2 + $0xf0] ss:$8 sps:$4 sm:$0xff]   ;;  %v2040_v56 = vrot.slane %v76_v54, %v80_v53  ;;  %v2044_v57 = vrot.slane %v76_v54, %v84_v55  ;;  %v1756_v1 = vld [vmem:[%s2392_s5 + $0x40] sm:$0xff]  }
  0x25   :  { %v1757_v2 = vld [vmem:[%s2392_s5] sm:$0xff]   ;;  %v1758_v3 = vld [vmem:[%s2392_s5 + $0x48] sm:$0xff]   ;;  %1570 = vmatprep.subr.bf16.mxu0 %v1756_v1  ;;  %v1760_v14 = vld [vmem:[%s2392_s5 + $0x50] sm:$0xff]  }
  0x26   :  { %1571 = vmatpush3.bf16.msra.mxu0 %v1757_v2  ;;  %v1759_v10 = vld [vmem:[%s2392_s5 + $0x8] sm:$0xff]   ;;  %v1765_v2 = vld [vmem:[%s2392_s5 + $0x20] sm:$0xff]  }
  0x27   :  { %727 = vmatpush1.bf16.msra.mxu1 %v1717_v17  ;;  %1572 = vmatprep.subr.bf16.mxu0 %v1758_v3 }
  0x28   :  { %728 = vmatprep.subr.bf16.mxu1 %v1722_v18 }
  0x29   :  { %1507 = vmatmul.mubr.msk.bf16.gmra.mrb[8].mxu0 %vm178_vm0, %v1694_v7  ;;  %1515 = vmatmul.mubr.msk.bf16.gmra.mrb[8].mxu1 %vm178_vm0, %v1702_v13 }
  0x2a   :  { %289 = vmatprep.mubr.bf16.mxu0 %v1887_v0  ;;  %369 = vmatprep.mubr.bf16.mxu1 %v1887_v0 }
  0x2b   :  { %729 = vmatpush1.bf16.msra.mxu1 %v1720_v20  ;;  %1573 = vmatpush3.bf16.msra.mxu0 %v1759_v10 }
  0x2c   :  { %730 = vmatprep.subr.bf16.mxu1 %v1725_v22  ;;  %1574 = vmatprep.subr.bf16.mxu0 %v1760_v14 }
  0x2f   :  { %731 = vmatpush1.bf16.msra.mxu1 %v1723_v23 }
  0x30   :  { %732 = vmatprep.subr.bf16.mxu1 %v1728_v24 }
  0x31   :  { %1508 = vmatmul.mubr.msk.bf16.gmra.mrb[12].mxu0 %vm178_vm0, %v1695_v15  ;;  %1516 = vmatmul.mubr.msk.bf16.gmra.mrb[12].mxu1 %vm178_vm0, %v1703_v19 }
  0x32   :  { %299 = vmatprep.mubr.bf16.mxu0 %v1887_v0  ;;  %379 = vmatprep.mubr.bf16.mxu1 %v1887_v0 }
  0x33   :  { %733 = vmatpush1.bf16.msra.mxu1 %v1726_v26 }
  0x34   :  { %734 = vmatprep.subr.bf16.mxu1 %v1731_v28  ;;  %v1761_v28 = vld [vmem:[%s2392_s5 + $0x10] sm:$0xff]  }
  0x35   :  { %1575 = vmatpush3.bf16.msra.mxu0 %v1761_v28 }
  0x37   :  { %735 = vmatpush1.bf16.msra.mxu1 %v1729_v29 }
  0x38   :  { %736 = vmatprep.subr.bf16.mxu1 %v1734_v30 }
  0x39   :  { %1509 = vmatmul.mubr.msk.bf16.gmra.mrb[16].mxu0 %vm178_vm0, %v1696_v21  ;;  %1517 = vmatmul.mubr.msk.bf16.gmra.mrb[16].mxu1 %vm178_vm0, %v1704_v25 }
  0x3a   :  { %309 = vmatprep.mubr.bf16.mxu0 %v1887_v0  ;;  %389 = vmatprep.mubr.bf16.mxu1 %v1887_v0 }
  0x3b   :  { %737 = vmatpush1.bf16.msra.mxu1 %v1732_v32  ;;  %v1762_v32 = vld [vmem:[%s2392_s5 + $0x58] sm:$0xff]  }
  0x3c   :  { %738 = vmatprep.subr.bf16.mxu1 %v1737_v34  ;;  %1576 = vmatprep.subr.bf16.mxu0 %v1762_v32 }
  0x3f   :  { %739 = vmatpush1.bf16.msra.mxu1 %v1735_v35 }
  0x40   :  { %740 = vmatprep.subr.bf16.mxu1 %v1740_v36 }
  0x41   :  { %1510 = vmatmul.mubr.msk.bf16.gmra.mrb[20].mxu0 %vm178_vm0, %v1697_v27  ;;  %1518 = vmatmul.mubr.msk.bf16.gmra.mrb[20].mxu1 %vm178_vm0, %v1705_v31 }
  0x42   :  { %319 = vmatprep.mubr.bf16.mxu0 %v1887_v0  ;;  %399 = vmatprep.mubr.bf16.mxu1 %v1887_v0 }
  0x43   :  { %741 = vmatpush1.bf16.msra.mxu1 %v1738_v38 }
  0x44   :  { %742 = vmatprep.subr.bf16.mxu1 %v1743_v40 }
  0x47   :  { %743 = vmatpush1.bf16.msra.mxu1 %v1741_v41 }
  0x48   :  { %744 = vmatprep.subr.bf16.mxu1 %v1746_v42  ;;  %v1763_v42 = vld [vmem:[%s2392_s5 + $0x18] sm:$0xff]  }
  0x49   :  { %1511 = vmatmul.mubr.msk.bf16.gmra.mrb[24].mxu0 %vm178_vm0, %v1698_v33  ;;  %1519 = vmatmul.mubr.msk.bf16.gmra.mrb[24].mxu1 %vm178_vm0, %v1706_v37 }
  0x4a   :  { %329 = vmatprep.mubr.bf16.mxu0 %v1887_v0  ;;  %409 = vmatprep.mubr.bf16.mxu1 %v1887_v0 }
  0x4b   :  { %745 = vmatpush1.bf16.msra.mxu1 %v1744_v44  ;;  %1577 = vmatpush3.bf16.msra.mxu0 %v1763_v42 }
  0x4c   :  { %746 = vmatprep.subr.bf16.mxu1 %v1749_v45 }
  0x4f   :  { %747 = vmatpush1.bf16.msra.mxu1 %v1747_v46  ;;  %v1764_v46 = vld [vmem:[%s2392_s5 + $0x60] sm:$0xff]  }
  0x50   :  { %748 = vmatprep.subr.bf16.mxu1 %v1752_v47  ;;  %1578 = vmatprep.subr.bf16.mxu0 %v1764_v46 }
  0x51   :  { %1512 = vmatmul.mubr.msk.bf16.gmra.mrb[28].mxu0 %vm178_vm0, %v1699_v39  ;;  %1520 = vmatmul.mubr.msk.bf16.gmra.mrb[28].mxu1 %vm178_vm0, %v1707_v43 }
  0x52   :  { %1579 = vmatpush3.bf16.msra.mxu0 %v1765_v2 }
  0x53   :  { %749 = vmatpush1.bf16.msra.mxu1 %v1750_v48 }
  0x54   :  { %750 = vmatprep.subr.bf16.mxu1 %v1755_v49 }
  0x57   :  { %751 = vmatpush1.bf16.msra.mxu1 %v1753_v50 }
  0xec   :  { %v261_v58 = vpop.f32.mrb[0].mxu0  ;;  %v341_v9 = vpop.f32.mrb[0].mxu1 }
  0xed   :  { %v262_v59 = vadd.f32 %v261_v58, %v2040_v56  ;;  %v263_v60 = vpop.f32.mrb[1].mxu0  ;;  %v342_v12 = vadd.f32 %v341_v9, %v2040_v56  ;;  %v343_v13 = vpop.f32.mrb[1].mxu1 }
  0xee   :  { %v264_v61 = vadd.f32 %v263_v60, %v2044_v57  ;;  %v265_v62 = vpop.f32.mrb[2].mxu0  ;;  %v344_v17 = vadd.f32 %v343_v13, %v2044_v57  ;;  %v345_v18 = vpop.f32.mrb[2].mxu1 }
  0xef   :  { %v266_v63 = vadd.f32 %v265_v62, %v2040_v56  ;;  %v267_v0 = vpop.f32.mrb[3].mxu0  ;;  %v420_v5 = vmax.f32 %v262_v59, 0.0  ;;  %v452_v21 = vmax.f32 %v342_v12, 0.0  ;;  %v346_v22 = vadd.f32 %v345_v18, %v2040_v56  ;;  %v347_v23 = vpop.f32.mrb[3].mxu1 }
  0xf0   :  { %v268_v4 = vadd.f32 %v267_v0, %v2044_v57  ;;  %v421_v7 = vmax.f32 %v264_v61, 0.0  ;;  %v453_v26 = vmax.f32 %v344_v17, 0.0  ;;  %v348_v27 = vadd.f32 %v347_v23, %v2044_v57 }
  0xf1   :  { %v422_v6 = vmax.f32 %v266_v63, 0.0  ;;  %v454_v31 = vmax.f32 %v346_v22, 0.0 }
  0xf2   :  { %v423_v8 = vmax.f32 %v268_v4, 0.0  ;;  %v455_v34 = vmax.f32 %v348_v27, 0.0 }
  0xf3   :  { %v484_v11 = vpack.c.bf16 %v422_v6, %v420_v5  ;;  %v2079_v37 = vpack.c.bf16 %v454_v31, %v452_v21  ;;  %v1766_v6 = vld [vmem:[%s2392_s5 + $0x68] sm:$0xff]  }
  0xf4   :  { %v485_v15 = vpack.c.bf16 %v423_v8, %v421_v7  ;;  %v271_v16 = vpop.f32.mrb[4].mxu0  ;;  %v2081_v40 = vpack.c.bf16 %v455_v34, %v453_v26  ;;  %v351_v41 = vpop.f32.mrb[4].mxu1  ;;  %1580 = vmatprep.subr.bf16.mxu0 %v1766_v6  ;;  %v1769_v34 = vld [vmem:[%s2392_s5 + $0x30] sm:$0xff]  }
  0xf5   :  { %v272_v19 = vadd.f32 %v271_v16, %v2040_v56  ;;  %v273_v20 = vpop.f32.mrb[5].mxu0  ;;  %v352_v44 = vadd.f32 %v351_v41, %v2040_v56  ;;  %v353_v45 = vpop.f32.mrb[5].mxu1  ;;  %v1767_v16 = vld [vmem:[%s2392_s5 + $0x28] sm:$0xff]  }
  0xf6   :  { %v274_v24 = vadd.f32 %v273_v20, %v2044_v57  ;;  %v275_v25 = vpop.f32.mrb[6].mxu0  ;;  %752 = vmatprep.mubr.bf16.mxu1 %v485_v15  ;;  %v354_v49 = vadd.f32 %v353_v45, %v2044_v57  ;;  %v355_v50 = vpop.f32.mrb[6].mxu1  ;;  %v1768_v20 = vld [vmem:[%s2392_s5 + $0x70] sm:$0xff]   ;;  %1581 = vmatpush3.bf16.msra.mxu0 %v1767_v16 }
  0xf7   :  { %v276_v29 = vadd.f32 %v275_v25, %v2040_v56  ;;  %v277_v30 = vpop.f32.mrb[7].mxu0  ;;  %753 = vmatmul.mubr.bf16.vlgmr.msra.gmra.mrb[32].mxu1 %v484_v11  ;;  %v424_v35 = vmax.f32 %v272_v19, 0.0  ;;  %v456_v59 = vmax.f32 %v352_v44, 0.0  ;;  %v356_v60 = vadd.f32 %v355_v50, %v2040_v56  ;;  %v357_v61 = vpop.f32.mrb[7].mxu1  ;;  %1582 = vmatprep.subr.bf16.mxu0 %v1768_v20 }
  0xf8   :  { %v278_v33 = vadd.f32 %v277_v30, %v2044_v57  ;;  %v425_v38 = vmax.f32 %v274_v24, 0.0  ;;  %v457_v0 = vmax.f32 %v354_v49, 0.0  ;;  %v358_v1 = vadd.f32 %v357_v61, %v2044_v57 }
  0xf9   :  { %v426_v36 = vmax.f32 %v276_v29, 0.0  ;;  %v458_v5 = vmax.f32 %v356_v60, 0.0 }
  0xfa   :  { %v427_v39 = vmax.f32 %v278_v33, 0.0  ;;  %v459_v8 = vmax.f32 %v358_v1, 0.0  ;;  %1583 = vmatpush3.bf16.msra.mxu0 %v1769_v34 }
  0xfb   :  { %v486_v43 = vpack.c.bf16 %v426_v36, %v424_v35  ;;  %v2103_v11 = vpack.c.bf16 %v458_v5, %v456_v59 }
  0xfc   :  { %v487_v47 = vpack.c.bf16 %v427_v39, %v425_v38  ;;  %v281_v48 = vpop.f32.mrb[8].mxu0  ;;  %v2105_v14 = vpack.c.bf16 %v459_v8, %v457_v0  ;;  %v361_v15 = vpop.f32.mrb[8].mxu1 }
  0xfd   :  { %v282_v54 = vadd.f32 %v281_v48, %v2040_v56  ;;  %v283_v58 = vpop.f32.mrb[9].mxu0  ;;  %v362_v18 = vadd.f32 %v361_v15, %v2040_v56  ;;  %v363_v19 = vpop.f32.mrb[9].mxu1 }
  0xfe   :  { %v284_v62 = vadd.f32 %v283_v58, %v2044_v57  ;;  %v285_v63 = vpop.f32.mrb[10].mxu0  ;;  %762 = vmatprep.mubr.bf16.mxu1 %v487_v47  ;;  %v364_v23 = vadd.f32 %v363_v19, %v2044_v57  ;;  %v365_v24 = vpop.f32.mrb[10].mxu1 }
  0xff   :  { %v286_v3 = vadd.f32 %v285_v63, %v2040_v56  ;;  %v287_v4 = vpop.f32.mrb[11].mxu0  ;;  %763 = vmatmul.mubr.bf16.gmra.mrb[36].mxu1 %v486_v43  ;;  %v428_v9 = vmax.f32 %v282_v54, 0.0  ;;  %v460_v27 = vmax.f32 %v362_v18, 0.0  ;;  %v366_v28 = vadd.f32 %v365_v24, %v2040_v56  ;;  %v367_v29 = vpop.f32.mrb[11].mxu1 }
 0x100   :  { %v288_v7 = vadd.f32 %v287_v4, %v2044_v57  ;;  %v429_v12 = vmax.f32 %v284_v62, 0.0  ;;  %v461_v32 = vmax.f32 %v364_v23, 0.0  ;;  %v368_v33 = vadd.f32 %v367_v29, %v2044_v57 }
 0x101   :  { %v430_v10 = vmax.f32 %v286_v3, 0.0  ;;  %v462_v38 = vmax.f32 %v366_v28, 0.0 }
 0x102   :  { %v431_v13 = vmax.f32 %v288_v7, 0.0  ;;  %v463_v41 = vmax.f32 %v368_v33, 0.0 }
 0x103   :  { %v488_v17 = vpack.c.bf16 %v430_v10, %v428_v9  ;;  %v2124_v44 = vpack.c.bf16 %v462_v38, %v460_v27 }
 0x104   :  { %v489_v21 = vpack.c.bf16 %v431_v13, %v429_v12  ;;  %v291_v22 = vpop.f32.mrb[12].mxu0  ;;  %v2126_v47 = vpack.c.bf16 %v463_v41, %v461_v32  ;;  %v371_v48 = vpop.f32.mrb[12].mxu1 }
 0x105   :  { %v292_v25 = vadd.f32 %v291_v22, %v2040_v56  ;;  %v293_v26 = vpop.f32.mrb[13].mxu0  ;;  %v372_v50 = vadd.f32 %v371_v48, %v2040_v56  ;;  %v373_v54 = vpop.f32.mrb[13].mxu1 }
 0x106   :  { %v294_v30 = vadd.f32 %v293_v26, %v2044_v57  ;;  %v295_v31 = vpop.f32.mrb[14].mxu0  ;;  %772 = vmatprep.mubr.bf16.mxu1 %v489_v21  ;;  %v374_v60 = vadd.f32 %v373_v54, %v2044_v57  ;;  %v375_v61 = vpop.f32.mrb[14].mxu1 }
 0x107   :  { %v296_v35 = vadd.f32 %v295_v31, %v2040_v56  ;;  %v297_v36 = vpop.f32.mrb[15].mxu0  ;;  %773 = vmatmul.mubr.bf16.gmra.mrb[40].mxu1 %v488_v17  ;;  %v432_v42 = vmax.f32 %v292_v25, 0.0  ;;  %v464_v0 = vmax.f32 %v372_v50, 0.0  ;;  %v376_v1 = vadd.f32 %v375_v61, %v2040_v56  ;;  %v377_v2 = vpop.f32.mrb[15].mxu1 }
 0x108   :  { %v298_v39 = vadd.f32 %v297_v36, %v2044_v57  ;;  %v433_v45 = vmax.f32 %v294_v30, 0.0  ;;  %v465_v5 = vmax.f32 %v374_v60, 0.0  ;;  %v378_v6 = vadd.f32 %v377_v2, %v2044_v57 }
 0x109   :  { %v434_v43 = vmax.f32 %v296_v35, 0.0  ;;  %v466_v9 = vmax.f32 %v376_v1, 0.0 }
 0x10a   :  { %v435_v46 = vmax.f32 %v298_v39, 0.0  ;;  %v467_v12 = vmax.f32 %v378_v6, 0.0 }
 0x10b   :  { %v490_v49 = vpack.c.bf16 %v434_v43, %v432_v42  ;;  %v2136_v16 = vpack.c.bf16 %v466_v9, %v464_v0 }
 0x10c   :  { %v491_v58 = vpack.c.bf16 %v435_v46, %v433_v45  ;;  %v301_v59 = vpop.f32.mrb[16].mxu0  ;;  %v2138_v19 = vpack.c.bf16 %v467_v12, %v465_v5  ;;  %v381_v20 = vpop.f32.mrb[16].mxu1 }
 0x10d   :  { %v302_v62 = vadd.f32 %v301_v59, %v2040_v56  ;;  %v303_v63 = vpop.f32.mrb[17].mxu0  ;;  %v382_v22 = vadd.f32 %v381_v20, %v2040_v56  ;;  %v383_v23 = vpop.f32.mrb[17].mxu1 }
 0x10e   :  { %v304_v3 = vadd.f32 %v303_v63, %v2044_v57  ;;  %v305_v4 = vpop.f32.mrb[18].mxu0  ;;  %782 = vmatprep.mubr.bf16.mxu1 %v491_v58  ;;  %v384_v26 = vadd.f32 %v383_v23, %v2044_v57  ;;  %v385_v27 = vpop.f32.mrb[18].mxu1 }
 0x10f   :  { %v306_v7 = vadd.f32 %v305_v4, %v2040_v56  ;;  %v307_v8 = vpop.f32.mrb[19].mxu0  ;;  %783 = vmatmul.mubr.bf16.gmra.mrb[44].mxu1 %v490_v49  ;;  %v436_v13 = vmax.f32 %v302_v62, 0.0  ;;  %v468_v30 = vmax.f32 %v382_v22, 0.0  ;;  %v386_v31 = vadd.f32 %v385_v27, %v2040_v56  ;;  %v387_v32 = vpop.f32.mrb[19].mxu1 }
 0x110   :  { %v308_v10 = vadd.f32 %v307_v8, %v2044_v57  ;;  %v437_v17 = vmax.f32 %v304_v3, 0.0  ;;  %v469_v35 = vmax.f32 %v384_v26, 0.0  ;;  %v388_v36 = vadd.f32 %v387_v32, %v2044_v57 }
 0x111   :  { %v438_v15 = vmax.f32 %v306_v7, 0.0  ;;  %v470_v41 = vmax.f32 %v386_v31, 0.0 }
 0x112   :  { %v439_v18 = vmax.f32 %v308_v10, 0.0  ;;  %v471_v43 = vmax.f32 %v388_v36, 0.0 }
 0x113   :  { %v492_v21 = vpack.c.bf16 %v438_v15, %v436_v13  ;;  %v2148_v48 = vpack.c.bf16 %v470_v41, %v468_v30 }
 0x114   :  { %v493_v24 = vpack.c.bf16 %v439_v18, %v437_v17  ;;  %v311_v25 = vpop.f32.mrb[20].mxu0  ;;  %v2150_v54 = vpack.c.bf16 %v471_v43, %v469_v35  ;;  %v391_v58 = vpop.f32.mrb[20].mxu1 }
 0x115   :  { %v312_v28 = vadd.f32 %v311_v25, %v2040_v56  ;;  %v313_v29 = vpop.f32.mrb[21].mxu0  ;;  %v392_v60 = vadd.f32 %v391_v58, %v2040_v56  ;;  %v393_v61 = vpop.f32.mrb[21].mxu1 }
 0x116   :  { %v314_v33 = vadd.f32 %v313_v29, %v2044_v57  ;;  %v315_v34 = vpop.f32.mrb[22].mxu0  ;;  %792 = vmatprep.mubr.bf16.mxu1 %v493_v24  ;;  %v394_v0 = vadd.f32 %v393_v61, %v2044_v57  ;;  %v395_v1 = vpop.f32.mrb[22].mxu1 }
 0x117   :  { %v316_v38 = vadd.f32 %v315_v34, %v2040_v56  ;;  %v317_v39 = vpop.f32.mrb[23].mxu0  ;;  %793 = vmatmul.mubr.bf16.gmra.mrb[48].mxu1 %v492_v21  ;;  %v440_v45 = vmax.f32 %v312_v28, 0.0  ;;  %v472_v4 = vmax.f32 %v392_v60, 0.0  ;;  %v396_v5 = vadd.f32 %v395_v1, %v2040_v56  ;;  %v397_v6 = vpop.f32.mrb[23].mxu1 }
 0x118   :  { %v318_v42 = vadd.f32 %v317_v39, %v2044_v57  ;;  %v441_v49 = vmax.f32 %v314_v33, 0.0  ;;  %v473_v9 = vmax.f32 %v394_v0, 0.0  ;;  %v398_v10 = vadd.f32 %v397_v6, %v2044_v57 }
 0x119   :  { %v442_v46 = vmax.f32 %v316_v38, 0.0  ;;  %v474_v15 = vmax.f32 %v396_v5, 0.0 }
 0x11a   :  { %v443_v50 = vmax.f32 %v318_v42, 0.0  ;;  %v475_v18 = vmax.f32 %v398_v10, 0.0 }
 0x11b   :  { %v494_v59 = vpack.c.bf16 %v442_v46, %v440_v45  ;;  %v2160_v22 = vpack.c.bf16 %v474_v15, %v472_v4 }
 0x11c   :  { %v495_v62 = vpack.c.bf16 %v443_v50, %v441_v49  ;;  %v321_v63 = vpop.f32.mrb[24].mxu0  ;;  %v511_v25 = vpack.c.bf16 %v475_v18, %v473_v9  ;;  %v401_v26 = vpop.f32.mrb[24].mxu1 }
 0x11d   :  { %v322_v2 = vadd.f32 %v321_v63, %v2040_v56  ;;  %v323_v3 = vpop.f32.mrb[25].mxu0  ;;  %v402_v28 = vadd.f32 %v401_v26, %v2040_v56  ;;  %v403_v29 = vpop.f32.mrb[25].mxu1 }
 0x11e   :  { %v324_v7 = vadd.f32 %v323_v3, %v2044_v57  ;;  %v325_v8 = vpop.f32.mrb[26].mxu0  ;;  %802 = vmatprep.mubr.bf16.mxu1 %v495_v62  ;;  %v404_v32 = vadd.f32 %v403_v29, %v2044_v57  ;;  %v405_v33 = vpop.f32.mrb[26].mxu1 }
 0x11f   :  { %v326_v12 = vadd.f32 %v325_v8, %v2040_v56  ;;  %v327_v13 = vpop.f32.mrb[27].mxu0  ;;  %803 = vmatmul.mubr.bf16.gmra.mrb[52].mxu1 %v494_v59  ;;  %v444_v20 = vmax.f32 %v322_v2, 0.0  ;;  %v476_v36 = vmax.f32 %v402_v28, 0.0  ;;  %v406_v38 = vadd.f32 %v405_v33, %v2040_v56  ;;  %v407_v39 = vpop.f32.mrb[27].mxu1 }
 0x120   :  { %v328_v17 = vadd.f32 %v327_v13, %v2044_v57  ;;  %v445_v23 = vmax.f32 %v324_v7, 0.0  ;;  %v477_v43 = vmax.f32 %v404_v32, 0.0  ;;  %v408_v45 = vadd.f32 %v407_v39, %v2044_v57 }
 0x121   :  { %v446_v21 = vmax.f32 %v326_v12, 0.0  ;;  %v478_v50 = vmax.f32 %v406_v38, 0.0 }
 0x122   :  { %v447_v24 = vmax.f32 %v328_v17, 0.0  ;;  %v479_v59 = vmax.f32 %v408_v45, 0.0 }
 0x123   :  { %v496_v27 = vpack.c.bf16 %v446_v21, %v444_v20  ;;  %v512_v62 = vpack.c.bf16 %v478_v50, %v476_v36 }
 0x124   :  { %v497_v30 = vpack.c.bf16 %v447_v24, %v445_v23  ;;  %v331_v31 = vpop.f32.mrb[28].mxu0  ;;  %v513_v1 = vpack.c.bf16 %v479_v59, %v477_v43  ;;  %v411_v2 = vpop.f32.mrb[28].mxu1 }
 0x125   :  { %v332_v34 = vadd.f32 %v331_v31, %v2040_v56  ;;  %v333_v35 = vpop.f32.mrb[29].mxu0  ;;  %v412_v4 = vadd.f32 %v411_v2, %v2040_v56  ;;  %v413_v5 = vpop.f32.mrb[29].mxu1 }
 0x126   :  { %v334_v41 = vadd.f32 %v333_v35, %v2044_v57  ;;  %v335_v42 = vpop.f32.mrb[30].mxu0  ;;  %812 = vmatprep.mubr.bf16.mxu1 %v497_v30  ;;  %v414_v7 = vadd.f32 %v413_v5, %v2044_v57  ;;  %v415_v8 = vpop.f32.mrb[30].mxu1 }
 0x127   :  { %v336_v46 = vadd.f32 %v335_v42, %v2040_v56  ;;  %v337_v49 = vpop.f32.mrb[31].mxu0  ;;  %813 = vmatmul.mubr.bf16.gmra.mrb[56].mxu1 %v496_v27  ;;  %v448_v60 = vmax.f32 %v332_v34, 0.0  ;;  %v480_v9 = vmax.f32 %v412_v4, 0.0  ;;  %v416_v10 = vadd.f32 %v415_v8, %v2040_v56  ;;  %v417_v12 = vpop.f32.mrb[31].mxu1  ;;  %v1770_v56 = vld [vmem:[%s2392_s5 + $0x78] sm:$0xff]  }
 0x128   :  { %v338_v58 = vadd.f32 %v337_v49, %v2044_v57  ;;  %v449_v63 = vmax.f32 %v334_v41, 0.0  ;;  %v481_v13 = vmax.f32 %v414_v7, 0.0  ;;  %v418_v15 = vadd.f32 %v417_v12, %v2044_v57  ;;  %v1771_v57 = vld [vmem:[%s2392_s5 + $0x38] sm:$0xff]   ;;  %1584 = vmatprep.subr.bf16.mxu0 %v1770_v56 }
 0x129   :  { %v450_v61 = vmax.f32 %v336_v46, 0.0  ;;  %v482_v17 = vmax.f32 %v416_v10, 0.0  ;;  %1585 = vmatpush3.bf16.msra.mxu0 %v1771_v57 }
 0x12a   :  { %v451_v0 = vmax.f32 %v338_v58, 0.0  ;;  %v483_v18 = vmax.f32 %v418_v15, 0.0 }
 0x12b   :  { %v498_v3 = vpack.c.bf16 %v450_v61, %v448_v60  ;;  %v514_v20 = vpack.c.bf16 %v482_v17, %v480_v9 }
 0x12c   :  { %v499_v6 = vpack.c.bf16 %v451_v0, %v449_v63  ;;  %v515_v21 = vpack.c.bf16 %v483_v18, %v481_v13 }
 0x12e   :  { %822 = vmatprep.mubr.bf16.mxu1 %v499_v6 }
 0x12f   :  { %823 = vmatmul.mubr.bf16.gmra.mrb[60].mxu1 %v498_v3 }
 0x130   :  { %832 = vmatprep.mubr.bf16.mxu1 %v2081_v40 }
 0x137   :  { %833 = vmatmul.mubr.bf16.gmra.mrb[64].mxu1 %v2079_v37  ;;  %v548_v37 = vld [vmem:[%s2391_s4] sm:$0x3] }
 0x138   :  { %842 = vmatprep.mubr.bf16.mxu1 %v2105_v14  ;;  %v2196_v40 = vrot.slane %v548_v37, %v80_v53 }
 0x13f   :  { %843 = vmatmul.mubr.bf16.gmra.mrb[68].mxu1 %v2103_v11  ;;  %v2200_v11 = vrot.slane %v548_v37, %v84_v55 }
 0x140   :  { %852 = vmatprep.mubr.bf16.mxu1 %v2126_v47 }
 0x147   :  { %853 = vmatmul.mubr.bf16.gmra.mrb[72].mxu1 %v2124_v44 }
 0x148   :  { %862 = vmatprep.mubr.bf16.mxu1 %v2138_v19 }
 0x14f   :  { %863 = vmatmul.mubr.bf16.gmra.mrb[76].mxu1 %v2136_v16 }
 0x150   :  { %872 = vmatprep.mubr.bf16.mxu1 %v2150_v54 }
 0x157   :  { %873 = vmatmul.mubr.bf16.gmra.mrb[80].mxu1 %v2148_v48 }
 0x158   :  { %882 = vmatprep.mubr.bf16.mxu1 %v511_v25 }
 0x15f   :  { %883 = vmatmul.mubr.bf16.gmra.mrb[84].mxu1 %v2160_v22 }
 0x160   :  { %892 = vmatprep.mubr.bf16.mxu1 %v513_v1 }
 0x167   :  { %893 = vmatmul.mubr.bf16.gmra.mrb[88].mxu1 %v512_v62 }
 0x168   :  { %902 = vmatprep.mubr.bf16.mxu1 %v515_v21 }
 0x16f   :  { %903 = vmatmul.mubr.bf16.gmra.mrb[92].mxu1 %v514_v20 }
 0x1ca   :  { %v754_v14 = vpop.f32.mrb[32].mxu1 }
 0x1cb   :  { %v755_v44 = vadd.f32 %v754_v14, %v2196_v40  ;;  %v756_v47 = vpop.f32.mrb[33].mxu1 }
 0x1cc   :  { %v757_v16 = vadd.f32 %v756_v47, %v2200_v11  ;;  %v758_v19 = vpop.f32.mrb[34].mxu1 }
 0x1cd   :  { %v759_v48 = vadd.f32 %v758_v19, %v2196_v40  ;;  %v760_v54 = vpop.f32.mrb[35].mxu1  ;;  %v913_v23 = vmax.f32 %v755_v44, 0.0 }
 0x1ce   :  { %v761_v22 = vadd.f32 %v760_v54, %v2200_v11  ;;  %v914_v53 = vmax.f32 %v757_v16, 0.0 }
 0x1cf   :  { %v915_v24 = vmax.f32 %v759_v48, 0.0 }
 0x1d0   :  { %v916_v25 = vmax.f32 %v761_v22, 0.0 }
 0x1d1   :  { %v977_v26 = vpack.c.bf16 %v915_v24, %v913_v23 }
 0x1d2   :  { %v978_v52 = vpack.c.bf16 %v916_v25, %v914_v53  ;;  %v764_v55 = vpop.f32.mrb[36].mxu1 }
 0x1d3   :  { %v765_v27 = vadd.f32 %v764_v55, %v2196_v40  ;;  %v766_v28 = vpop.f32.mrb[37].mxu1 }
 0x1d4   :  { %v767_v29 = vadd.f32 %v766_v28, %v2200_v11  ;;  %v768_v30 = vpop.f32.mrb[38].mxu1  ;;  %1176 = vmatprep.mubr.bf16.mxu0 %v978_v52 }
 0x1d5   :  { %v769_v31 = vadd.f32 %v768_v30, %v2196_v40  ;;  %v770_v32 = vpop.f32.mrb[39].mxu1  ;;  %1177 = vmatmul.mubr.bf16.vlgmr.msra.gmra.mrb[32].mxu0 %v977_v26  ;;  %v917_v34 = vmax.f32 %v765_v27, 0.0 }
 0x1d6   :  { %v771_v33 = vadd.f32 %v770_v32, %v2200_v11  ;;  %v918_v36 = vmax.f32 %v767_v29, 0.0 }
 0x1d7   :  { %v919_v35 = vmax.f32 %v769_v31, 0.0 }
 0x1d8   :  { %v920_v38 = vmax.f32 %v771_v33, 0.0 }
 0x1d9   :  { %v979_v39 = vpack.c.bf16 %v919_v35, %v917_v34 }
 0x1da   :  { %v980_v41 = vpack.c.bf16 %v920_v38, %v918_v36  ;;  %v774_v42 = vpop.f32.mrb[40].mxu1 }
 0x1db   :  { %v775_v43 = vadd.f32 %v774_v42, %v2196_v40  ;;  %v776_v45 = vpop.f32.mrb[41].mxu1 }
 0x1dc   :  { %v777_v46 = vadd.f32 %v776_v45, %v2200_v11  ;;  %v778_v49 = vpop.f32.mrb[42].mxu1  ;;  %1184 = vmatprep.mubr.bf16.mxu0 %v980_v41 }
 0x1dd   :  { %v779_v50 = vadd.f32 %v778_v49, %v2196_v40  ;;  %v780_v58 = vpop.f32.mrb[43].mxu1  ;;  %1185 = vmatmul.mubr.bf16.gmra.mrb[36].mxu0 %v979_v39  ;;  %v921_v60 = vmax.f32 %v775_v43, 0.0 }
 0x1de   :  { %v781_v59 = vadd.f32 %v780_v58, %v2200_v11  ;;  %v922_v62 = vmax.f32 %v777_v46, 0.0 }
 0x1df   :  { %v923_v61 = vmax.f32 %v779_v50, 0.0 }
 0x1e0   :  { %v924_v63 = vmax.f32 %v781_v59, 0.0 }
 0x1e1   :  { %v981_v0 = vpack.c.bf16 %v923_v61, %v921_v60 }
 0x1e2   :  { %v982_v1 = vpack.c.bf16 %v924_v63, %v922_v62  ;;  %v784_v2 = vpop.f32.mrb[44].mxu1 }
 0x1e3   :  { %v785_v3 = vadd.f32 %v784_v2, %v2196_v40  ;;  %v786_v4 = vpop.f32.mrb[45].mxu1 }
 0x1e4   :  { %v787_v5 = vadd.f32 %v786_v4, %v2200_v11  ;;  %v788_v6 = vpop.f32.mrb[46].mxu1  ;;  %1192 = vmatprep.mubr.bf16.mxu0 %v982_v1 }
 0x1e5   :  { %v789_v7 = vadd.f32 %v788_v6, %v2196_v40  ;;  %v790_v8 = vpop.f32.mrb[47].mxu1  ;;  %1193 = vmatmul.mubr.bf16.gmra.mrb[40].mxu0 %v981_v0  ;;  %v925_v10 = vmax.f32 %v785_v3, 0.0 }
 0x1e6   :  { %v791_v9 = vadd.f32 %v790_v8, %v2200_v11  ;;  %v926_v13 = vmax.f32 %v787_v5, 0.0 }
 0x1e7   :  { %v927_v12 = vmax.f32 %v789_v7, 0.0 }
 0x1e8   :  { %v928_v15 = vmax.f32 %v791_v9, 0.0 }
 0x1e9   :  { %v983_v17 = vpack.c.bf16 %v927_v12, %v925_v10 }
 0x1ea   :  { %v984_v18 = vpack.c.bf16 %v928_v15, %v926_v13  ;;  %v794_v20 = vpop.f32.mrb[48].mxu1 }
 0x1eb   :  { %v795_v21 = vadd.f32 %v794_v20, %v2196_v40  ;;  %v796_v56 = vpop.f32.mrb[49].mxu1 }
 0x1ec   :  { %v797_v57 = vadd.f32 %v796_v56, %v2200_v11  ;;  %v798_v37 = vpop.f32.mrb[50].mxu1  ;;  %1200 = vmatprep.mubr.bf16.mxu0 %v984_v18 }
 0x1ed   :  { %v799_v14 = vadd.f32 %v798_v37, %v2196_v40  ;;  %v800_v44 = vpop.f32.mrb[51].mxu1  ;;  %1201 = vmatmul.mubr.bf16.gmra.mrb[44].mxu0 %v983_v17  ;;  %v929_v16 = vmax.f32 %v795_v21, 0.0 }
 0x1ee   :  { %v801_v47 = vadd.f32 %v800_v44, %v2200_v11  ;;  %v930_v48 = vmax.f32 %v797_v57, 0.0 }
 0x1ef   :  { %v931_v19 = vmax.f32 %v799_v14, 0.0 }
 0x1f0   :  { %v932_v54 = vmax.f32 %v801_v47, 0.0 }
 0x1f1   :  { %v985_v22 = vpack.c.bf16 %v931_v19, %v929_v16 }
 0x1f2   :  { %v986_v23 = vpack.c.bf16 %v932_v54, %v930_v48  ;;  %v804_v24 = vpop.f32.mrb[52].mxu1 }
 0x1f3   :  { %v805_v53 = vadd.f32 %v804_v24, %v2196_v40  ;;  %v806_v25 = vpop.f32.mrb[53].mxu1 }
 0x1f4   :  { %v807_v26 = vadd.f32 %v806_v25, %v2200_v11  ;;  %v808_v52 = vpop.f32.mrb[54].mxu1  ;;  %1208 = vmatprep.mubr.bf16.mxu0 %v986_v23 }
 0x1f5   :  { %v809_v55 = vadd.f32 %v808_v52, %v2196_v40  ;;  %v810_v27 = vpop.f32.mrb[55].mxu1  ;;  %1209 = vmatmul.mubr.bf16.gmra.mrb[48].mxu0 %v985_v22  ;;  %v933_v29 = vmax.f32 %v805_v53, 0.0 }
 0x1f6   :  { %v811_v28 = vadd.f32 %v810_v27, %v2200_v11  ;;  %v934_v31 = vmax.f32 %v807_v26, 0.0 }
 0x1f7   :  { %v935_v30 = vmax.f32 %v809_v55, 0.0 }
 0x1f8   :  { %v936_v32 = vmax.f32 %v811_v28, 0.0 }
 0x1f9   :  { %v987_v33 = vpack.c.bf16 %v935_v30, %v933_v29 }
 0x1fa   :  { %v988_v34 = vpack.c.bf16 %v936_v32, %v934_v31  ;;  %v814_v35 = vpop.f32.mrb[56].mxu1 }
 0x1fb   :  { %v815_v36 = vadd.f32 %v814_v35, %v2196_v40  ;;  %v816_v38 = vpop.f32.mrb[57].mxu1 }
 0x1fc   :  { %v817_v39 = vadd.f32 %v816_v38, %v2200_v11  ;;  %v818_v41 = vpop.f32.mrb[58].mxu1  ;;  %1216 = vmatprep.mubr.bf16.mxu0 %v988_v34 }
 0x1fd   :  { %v819_v42 = vadd.f32 %v818_v41, %v2196_v40  ;;  %v820_v43 = vpop.f32.mrb[59].mxu1  ;;  %1217 = vmatmul.mubr.bf16.gmra.mrb[52].mxu0 %v987_v33  ;;  %v937_v46 = vmax.f32 %v815_v36, 0.0 }
 0x1fe   :  { %v821_v45 = vadd.f32 %v820_v43, %v2200_v11  ;;  %v938_v50 = vmax.f32 %v817_v39, 0.0 }
 0x1ff   :  { %v939_v49 = vmax.f32 %v819_v42, 0.0 }
 0x200   :  { %v940_v58 = vmax.f32 %v821_v45, 0.0 }
 0x201   :  { %v989_v59 = vpack.c.bf16 %v939_v49, %v937_v46 }
 0x202   :  { %v990_v60 = vpack.c.bf16 %v940_v58, %v938_v50  ;;  %v824_v61 = vpop.f32.mrb[60].mxu1 }
 0x203   :  { %v825_v62 = vadd.f32 %v824_v61, %v2196_v40  ;;  %v826_v63 = vpop.f32.mrb[61].mxu1 }
 0x204   :  { %v827_v0 = vadd.f32 %v826_v63, %v2200_v11  ;;  %v828_v1 = vpop.f32.mrb[62].mxu1  ;;  %1224 = vmatprep.mubr.bf16.mxu0 %v990_v60 }
 0x205   :  { %v829_v2 = vadd.f32 %v828_v1, %v2196_v40  ;;  %v830_v3 = vpop.f32.mrb[63].mxu1  ;;  %1225 = vmatmul.mubr.bf16.gmra.mrb[56].mxu0 %v989_v59  ;;  %v941_v5 = vmax.f32 %v825_v62, 0.0 }
 0x206   :  { %v831_v4 = vadd.f32 %v830_v3, %v2200_v11  ;;  %v942_v7 = vmax.f32 %v827_v0, 0.0 }
 0x207   :  { %v943_v6 = vmax.f32 %v829_v2, 0.0 }
 0x208   :  { %v944_v8 = vmax.f32 %v831_v4, 0.0 }
 0x209   :  { %v991_v9 = vpack.c.bf16 %v943_v6, %v941_v5 }
 0x20a   :  { %v992_v10 = vpack.c.bf16 %v944_v8, %v942_v7  ;;  %v834_v12 = vpop.f32.mrb[64].mxu1 }
 0x20b   :  { %v835_v13 = vadd.f32 %v834_v12, %v2196_v40  ;;  %v836_v15 = vpop.f32.mrb[65].mxu1 }
 0x20c   :  { %v837_v17 = vadd.f32 %v836_v15, %v2200_v11  ;;  %v838_v18 = vpop.f32.mrb[66].mxu1  ;;  %1232 = vmatprep.mubr.bf16.mxu0 %v992_v10 }
 0x20d   :  { %v839_v20 = vadd.f32 %v838_v18, %v2196_v40  ;;  %v840_v21 = vpop.f32.mrb[67].mxu1  ;;  %1233 = vmatmul.mubr.bf16.gmra.mrb[60].mxu0 %v991_v9  ;;  %v945_v57 = vmax.f32 %v835_v13, 0.0 }
 0x20e   :  { %v841_v56 = vadd.f32 %v840_v21, %v2200_v11  ;;  %v946_v14 = vmax.f32 %v837_v17, 0.0 }
 0x20f   :  { %v947_v37 = vmax.f32 %v839_v20, 0.0 }
 0x210   :  { %v948_v44 = vmax.f32 %v841_v56, 0.0 }
 0x211   :  { %v993_v47 = vpack.c.bf16 %v947_v37, %v945_v57 }
 0x212   :  { %v994_v16 = vpack.c.bf16 %v948_v44, %v946_v14  ;;  %v844_v19 = vpop.f32.mrb[68].mxu1 }
 0x213   :  { %v845_v48 = vadd.f32 %v844_v19, %v2196_v40  ;;  %v846_v54 = vpop.f32.mrb[69].mxu1 }
 0x214   :  { %v847_v22 = vadd.f32 %v846_v54, %v2200_v11  ;;  %v848_v23 = vpop.f32.mrb[70].mxu1  ;;  %1240 = vmatprep.mubr.bf16.mxu0 %v994_v16 }
 0x215   :  { %v849_v24 = vadd.f32 %v848_v23, %v2196_v40  ;;  %v850_v53 = vpop.f32.mrb[71].mxu1  ;;  %1241 = vmatmul.mubr.bf16.gmra.mrb[64].mxu0 %v993_v47  ;;  %v949_v26 = vmax.f32 %v845_v48, 0.0 }
 0x216   :  { %v851_v25 = vadd.f32 %v850_v53, %v2200_v11  ;;  %v950_v55 = vmax.f32 %v847_v22, 0.0 }
 0x217   :  { %v951_v52 = vmax.f32 %v849_v24, 0.0 }
 0x218   :  { %v952_v27 = vmax.f32 %v851_v25, 0.0 }
 0x219   :  { %v995_v28 = vpack.c.bf16 %v951_v52, %v949_v26 }
 0x21a   :  { %v996_v29 = vpack.c.bf16 %v952_v27, %v950_v55  ;;  %v854_v30 = vpop.f32.mrb[72].mxu1 }
 0x21b   :  { %v855_v31 = vadd.f32 %v854_v30, %v2196_v40  ;;  %v856_v32 = vpop.f32.mrb[73].mxu1 }
 0x21c   :  { %v857_v33 = vadd.f32 %v856_v32, %v2200_v11  ;;  %v858_v34 = vpop.f32.mrb[74].mxu1  ;;  %1248 = vmatprep.mubr.bf16.mxu0 %v996_v29 }
 0x21d   :  { %v859_v35 = vadd.f32 %v858_v34, %v2196_v40  ;;  %v860_v36 = vpop.f32.mrb[75].mxu1  ;;  %1249 = vmatmul.mubr.bf16.gmra.mrb[68].mxu0 %v995_v28  ;;  %v953_v39 = vmax.f32 %v855_v31, 0.0 }
 0x21e   :  { %v861_v38 = vadd.f32 %v860_v36, %v2200_v11  ;;  %v954_v42 = vmax.f32 %v857_v33, 0.0 }
 0x21f   :  { %v955_v41 = vmax.f32 %v859_v35, 0.0 }
 0x220   :  { %v956_v43 = vmax.f32 %v861_v38, 0.0 }
 0x221   :  { %v997_v45 = vpack.c.bf16 %v955_v41, %v953_v39 }
 0x222   :  { %v998_v46 = vpack.c.bf16 %v956_v43, %v954_v42  ;;  %v864_v49 = vpop.f32.mrb[76].mxu1 }
 0x223   :  { %v865_v50 = vadd.f32 %v864_v49, %v2196_v40  ;;  %v866_v58 = vpop.f32.mrb[77].mxu1 }
 0x224   :  { %v867_v59 = vadd.f32 %v866_v58, %v2200_v11  ;;  %v868_v60 = vpop.f32.mrb[78].mxu1  ;;  %1256 = vmatprep.mubr.bf16.mxu0 %v998_v46 }
 0x225   :  { %v869_v61 = vadd.f32 %v868_v60, %v2196_v40  ;;  %v870_v62 = vpop.f32.mrb[79].mxu1  ;;  %1257 = vmatmul.mubr.bf16.gmra.mrb[72].mxu0 %v997_v45  ;;  %v957_v0 = vmax.f32 %v865_v50, 0.0 }
 0x226   :  { %v871_v63 = vadd.f32 %v870_v62, %v2200_v11  ;;  %v958_v2 = vmax.f32 %v867_v59, 0.0 }
 0x227   :  { %v959_v1 = vmax.f32 %v869_v61, 0.0 }
 0x228   :  { %v960_v3 = vmax.f32 %v871_v63, 0.0 }
 0x229   :  { %v999_v4 = vpack.c.bf16 %v959_v1, %v957_v0 }
 0x22a   :  { %v1000_v5 = vpack.c.bf16 %v960_v3, %v958_v2  ;;  %v874_v6 = vpop.f32.mrb[80].mxu1  ;;  %v2269_v2 = vld [vmem:[%s2393_s6] ss:$0 sm:$0xff]  ;;  %s1888_s6 = smov [#allocation5]  }
 0x22b   :  { %v875_v7 = vadd.f32 %v874_v6, %v2196_v40  ;;  %v876_v8 = vpop.f32.mrb[81].mxu1  ;;  %s1475_s14 = sshll.u32 %s1888_s6, 4  ;;  %s1476_s14 = int_to_ptr.vmem [resolvable:$true] %s1475_s14 }
 0x22c   :  { %v877_v9 = vadd.f32 %v876_v8, %v2200_v11  ;;  %v878_v10 = vpop.f32.mrb[82].mxu1  ;;  %1264 = vmatprep.mubr.bf16.mxu0 %v1000_v5  ;;  %s1858_s15 = scalar_lea.vmem %s1476_s14, 4096  ;;  %p1863_p9 = scmp.lt.s32.totalorder %s1476_s14, %s1476_s14 }
 0x22d   :  { %v879_v12 = vadd.f32 %v878_v10, %v2196_v40  ;;  %v880_v13 = vpop.f32.mrb[83].mxu1  ;;  %1265 = vmatmul.mubr.bf16.gmra.mrb[76].mxu0 %v999_v4  ;;  %v961_v17 = vmax.f32 %v875_v7, 0.0  ;;  %p1859_p8 = scmp.ne.s32.totalorder %s1476_s14, %s1858_s15  ;;  %p1864_p10 = scmp.lt.s32.totalorder %s1858_s15, %s1858_s15 }
 0x22e   :  { %v881_v15 = vadd.f32 %v880_v13, %v2200_v11  ;;  %v962_v20 = vmax.f32 %v877_v9, 0.0  ;;  %v1402_v13 = vand.u32 127, %v78_v51 }
 0x22f   :  { %v963_v18 = vmax.f32 %v879_v12, 0.0  ;;  %p1865_p11 = por %p1864_p10, %p1863_p9 }
 0x230   :  { %v964_v21 = vmax.f32 %v881_v15, 0.0  ;;  %vm1403_vm1 = vcmp.ge.s32.totalorder %v1402_v13, 4  ;;  %vm1404_vm2 = vcmp.lt.s32.totalorder %v1402_v13, 8 }
 0x231   :  { %v1001_v56 = vpack.c.bf16 %v963_v18, %v961_v17  ;;  %vm2276_vm3 = vmand %vm1403_vm1, %vm1404_vm2  ;;  %p1866_p12 = pnand %p1865_p11, %p1859_p8 }
 0x232   :  { %v1002_v57 = vpack.c.bf16 %v964_v21, %v962_v20  ;;  %v884_v37 = vpop.f32.mrb[84].mxu1 }
 0x233   :  { %v885_v14 = vadd.f32 %v884_v37, %v2196_v40  ;;  %v886_v44 = vpop.f32.mrb[85].mxu1 }
 0x234   :  { %v887_v47 = vadd.f32 %v886_v44, %v2200_v11  ;;  %v888_v16 = vpop.f32.mrb[86].mxu1  ;;  %1272 = vmatprep.mubr.bf16.mxu0 %v1002_v57 }
 0x235   :  { %v889_v19 = vadd.f32 %v888_v16, %v2196_v40  ;;  %v890_v48 = vpop.f32.mrb[87].mxu1  ;;  %1273 = vmatmul.mubr.bf16.gmra.mrb[80].mxu0 %v1001_v56  ;;  %v965_v22 = vmax.f32 %v885_v14, 0.0 }
 0x236   :  { %v891_v54 = vadd.f32 %v890_v48, %v2200_v11  ;;  %v966_v24 = vmax.f32 %v887_v47, 0.0 }
 0x237   :  { %v967_v23 = vmax.f32 %v889_v19, 0.0 }
 0x238   :  { %v968_v53 = vmax.f32 %v891_v54, 0.0 }
 0x239   :  { %v1003_v25 = vpack.c.bf16 %v967_v23, %v965_v22 }
 0x23a   :  { %v1004_v26 = vpack.c.bf16 %v968_v53, %v966_v24  ;;  %v894_v52 = vpop.f32.mrb[88].mxu1 }
 0x23b   :  { %v895_v55 = vadd.f32 %v894_v52, %v2196_v40  ;;  %v896_v27 = vpop.f32.mrb[89].mxu1 }
 0x23c   :  { %v897_v28 = vadd.f32 %v896_v27, %v2200_v11  ;;  %v898_v29 = vpop.f32.mrb[90].mxu1  ;;  %1280 = vmatprep.mubr.bf16.mxu0 %v1004_v26 }
 0x23d   :  { %v899_v30 = vadd.f32 %v898_v29, %v2196_v40  ;;  %v900_v31 = vpop.f32.mrb[91].mxu1  ;;  %1281 = vmatmul.mubr.bf16.gmra.mrb[84].mxu0 %v1003_v25  ;;  %v969_v33 = vmax.f32 %v895_v55, 0.0 }
 0x23e   :  { %v901_v32 = vadd.f32 %v900_v31, %v2200_v11  ;;  %v970_v35 = vmax.f32 %v897_v28, 0.0 }
 0x23f   :  { %v971_v34 = vmax.f32 %v899_v30, 0.0 }
 0x240   :  { %v972_v36 = vmax.f32 %v901_v32, 0.0 }
 0x241   :  { %v1005_v38 = vpack.c.bf16 %v971_v34, %v969_v33 }
 0x242   :  { %v1006_v39 = vpack.c.bf16 %v972_v36, %v970_v35  ;;  %v904_v41 = vpop.f32.mrb[92].mxu1 }
 0x243   :  { %v905_v42 = vadd.f32 %v904_v41, %v2196_v40  ;;  %v906_v43 = vpop.f32.mrb[93].mxu1 }
 0x244   :  { %v907_v45 = vadd.f32 %v906_v43, %v2200_v11  ;;  %v908_v46 = vpop.f32.mrb[94].mxu1  ;;  %1288 = vmatprep.mubr.bf16.mxu0 %v1006_v39 }
 0x245   :  { %v909_v49 = vadd.f32 %v908_v46, %v2196_v40  ;;  %v910_v50 = vpop.f32.mrb[95].mxu1  ;;  %1289 = vmatmul.mubr.bf16.gmra.mrb[88].mxu0 %v1005_v38  ;;  %v973_v59 = vmax.f32 %v905_v42, 0.0 }
 0x246   :  { %v911_v58 = vadd.f32 %v910_v50, %v2200_v11  ;;  %v974_v61 = vmax.f32 %v907_v45, 0.0 }
 0x247   :  { %v975_v60 = vmax.f32 %v909_v49, 0.0 }
 0x248   :  { %v976_v62 = vmax.f32 %v911_v58, 0.0 }
 0x249   :  { %v1007_v63 = vpack.c.bf16 %v975_v60, %v973_v59 }
 0x24a   :  { %v1008_v0 = vpack.c.bf16 %v976_v62, %v974_v61 }
 0x24c   :  { %1296 = vmatprep.mubr.bf16.mxu0 %v1008_v0 }
 0x24d   :  { %1297 = vmatmul.mubr.bf16.gmra.mrb[92].mxu0 %v1007_v63 }
 0x2a8   :  { %v1586_v1 = vpop.f32.mrb[32].mxu0 }
 0x2a9   :  { %v1587_v3 = vpop.f32.mrb[33].mxu0 }
 0x2aa   :  { %v1588_v40 = vadd.f32 %v1587_v3, %v1586_v1  ;;  %v1589_v4 = vpop.f32.mrb[34].mxu0 }
 0x2ab   :  { %v1590_v5 = vpop.f32.mrb[35].mxu0 }
 0x2ac   :  { %v1179_v11 = vadd.f32 %v1588_v40, %v2269_v2  ;;  %v1591_v6 = vadd.f32 %v1590_v5, %v1589_v4 }
 0x2ae   :  { %1772 = vtanh.f32 %v1179_v11  ;;  %v1182_v7 = vadd.f32 %v1591_v6, %v2269_v2 }
 0x2b0   :  { %1774 = vtanh.f32 %v1182_v7  ;;  %v1592_v8 = vpop.f32.mrb[36].mxu0 }
 0x2b1   :  { %v1593_v9 = vpop.f32.mrb[37].mxu0 }
 0x2b2   :  { %v1594_v10 = vadd.f32 %v1593_v9, %v1592_v8  ;;  %v1595_v12 = vpop.f32.mrb[38].mxu0 }
 0x2b3   :  { %v1596_v15 = vpop.f32.mrb[39].mxu0 }
 0x2b4   :  { %v1187_v17 = vadd.f32 %v1594_v10, %v2269_v2  ;;  %v1597_v18 = vadd.f32 %v1596_v15, %v1595_v12 }
 0x2b6   :  { %1776 = vtanh.f32 %v1187_v17  ;;  %v1190_v20 = vadd.f32 %v1597_v18, %v2269_v2 }
 0x2b8   :  { %v1773_v21 = vpop.eup %1772  ;;  %1778 = vtanh.f32 %v1190_v20  ;;  %v1598_v56 = vpop.f32.mrb[40].mxu0 }
 0x2b9   :  { %v1337_v57 = vmul.f32 3.5, %v1773_v21  ;;  %v1599_v37 = vpop.f32.mrb[41].mxu0 }
 0x2ba   :  { %v1775_v14 = vpop.eup %1774  ;;  %v1600_v51 = vadd.f32 %v1599_v37, %v1598_v56  ;;  %v1601_v47 = vpop.f32.mrb[42].mxu0 }
 0x2bb   :  { %v1369_v16 = vadd.f32 -1.5, %v1337_v57  ;;  %v1338_v19 = vmul.f32 3.5, %v1775_v14  ;;  %v1602_v48 = vpop.f32.mrb[43].mxu0 }
 0x2bc   :  { %v1195_v54 = vadd.f32 %v1600_v51, %v2269_v2  ;;  %v1603_v22 = vadd.f32 %v1602_v48, %v1601_v47 }
 0x2bd   :  { %v1406_v23 = vsel %vm2276_vm3, %v1369_v16, %v1179_v11  ;;  %v1370_v24 = vadd.f32 -1.5, %v1338_v19 }
 0x2be   :  { %1438 = vst [vmem:[#allocation5] sm:$0xff] %v1406_v23  ;;  %1780 = vtanh.f32 %v1195_v54  ;;  %v1198_v53 = vadd.f32 %v1603_v22, %v2269_v2 }
 0x2bf   :  { %v1407_v25 = vsel %vm2276_vm3, %v1370_v24, %v1182_v7 }
 0x2c0   :  { %v1777_v26 = vpop.eup %1776  ;;  %1439 = vst [vmem:[#allocation5 + $0x8] sm:$0xff] %v1407_v25  ;;  %1782 = vtanh.f32 %v1198_v53  ;;  %v1604_v52 = vpop.f32.mrb[44].mxu0 }
 0x2c1   :  { %v1339_v55 = vmul.f32 3.5, %v1777_v26  ;;  %v1605_v27 = vpop.f32.mrb[45].mxu0 }
 0x2c2   :  { %v1779_v28 = vpop.eup %1778  ;;  %v1606_v29 = vadd.f32 %v1605_v27, %v1604_v52  ;;  %v1607_v30 = vpop.f32.mrb[46].mxu0 }
 0x2c3   :  { %v1371_v31 = vadd.f32 -1.5, %v1339_v55  ;;  %v1340_v32 = vmul.f32 3.5, %v1779_v28  ;;  %v1608_v33 = vpop.f32.mrb[47].mxu0 }
 0x2c4   :  { %v1203_v34 = vadd.f32 %v1606_v29, %v2269_v2  ;;  %v1609_v35 = vadd.f32 %v1608_v33, %v1607_v30 }
 0x2c5   :  { %v1408_v36 = vsel %vm2276_vm3, %v1371_v31, %v1187_v17  ;;  %v1372_v38 = vadd.f32 -1.5, %v1340_v32 }
 0x2c6   :  { %1440 = vst [vmem:[#allocation5 + $0x10] sm:$0xff] %v1408_v36  ;;  %1784 = vtanh.f32 %v1203_v34  ;;  %v1206_v39 = vadd.f32 %v1609_v35, %v2269_v2 }
 0x2c7   :  { %v1409_v41 = vsel %vm2276_vm3, %v1372_v38, %v1190_v20 }
 0x2c8   :  { %v1781_v42 = vpop.eup %1780  ;;  %1441 = vst [vmem:[#allocation5 + $0x18] sm:$0xff] %v1409_v41  ;;  %1786 = vtanh.f32 %v1206_v39  ;;  %v1610_v43 = vpop.f32.mrb[48].mxu0 }
 0x2c9   :  { %v1341_v45 = vmul.f32 3.5, %v1781_v42  ;;  %v1611_v46 = vpop.f32.mrb[49].mxu0 }
 0x2ca   :  { %v1783_v49 = vpop.eup %1782  ;;  %v1612_v50 = vadd.f32 %v1611_v46, %v1610_v43  ;;  %v1613_v58 = vpop.f32.mrb[50].mxu0 }
 0x2cb   :  { %v1373_v59 = vadd.f32 -1.5, %v1341_v45  ;;  %v1342_v60 = vmul.f32 3.5, %v1783_v49  ;;  %v1614_v61 = vpop.f32.mrb[51].mxu0 }
 0x2cc   :  { %v1211_v62 = vadd.f32 %v1612_v50, %v2269_v2  ;;  %v1615_v63 = vadd.f32 %v1614_v61, %v1613_v58 }
 0x2cd   :  { %v1410_v0 = vsel %vm2276_vm3, %v1373_v59, %v1195_v54  ;;  %v1374_v1 = vadd.f32 -1.5, %v1342_v60 }
 0x2ce   :  { %1442 = vst [vmem:[#allocation5 + $0x20] sm:$0xff] %v1410_v0  ;;  %1788 = vtanh.f32 %v1211_v62  ;;  %v1214_v3 = vadd.f32 %v1615_v63, %v2269_v2 }
 0x2cf   :  { %v1411_v40 = vsel %vm2276_vm3, %v1374_v1, %v1198_v53 }
 0x2d0   :  { %v1785_v4 = vpop.eup %1784  ;;  %1443 = vst [vmem:[#allocation5 + $0x28] sm:$0xff] %v1411_v40  ;;  %1790 = vtanh.f32 %v1214_v3  ;;  %v1616_v5 = vpop.f32.mrb[52].mxu0 }
 0x2d1   :  { %v1343_v11 = vmul.f32 3.5, %v1785_v4  ;;  %v1617_v6 = vpop.f32.mrb[53].mxu0 }
 0x2d2   :  { %v1787_v7 = vpop.eup %1786  ;;  %v1618_v8 = vadd.f32 %v1617_v6, %v1616_v5  ;;  %v1619_v9 = vpop.f32.mrb[54].mxu0 }
 0x2d3   :  { %v1375_v10 = vadd.f32 -1.5, %v1343_v11  ;;  %v1344_v12 = vmul.f32 3.5, %v1787_v7  ;;  %v1620_v13 = vpop.f32.mrb[55].mxu0 }
 0x2d4   :  { %v1219_v15 = vadd.f32 %v1618_v8, %v2269_v2  ;;  %v1621_v17 = vadd.f32 %v1620_v13, %v1619_v9 }
 0x2d5   :  { %v1412_v18 = vsel %vm2276_vm3, %v1375_v10, %v1203_v34  ;;  %v1376_v20 = vadd.f32 -1.5, %v1344_v12 }
 0x2d6   :  { %1444 = vst [vmem:[#allocation5 + $0x30] sm:$0xff] %v1412_v18  ;;  %1792 = vtanh.f32 %v1219_v15  ;;  %v1222_v21 = vadd.f32 %v1621_v17, %v2269_v2 }
 0x2d7   :  { %v1413_v56 = vsel %vm2276_vm3, %v1376_v20, %v1206_v39 }
 0x2d8   :  { %v1789_v57 = vpop.eup %1788  ;;  %1445 = vst [vmem:[#allocation5 + $0x38] sm:$0xff] %v1413_v56  ;;  %1794 = vtanh.f32 %v1222_v21  ;;  %v1622_v37 = vpop.f32.mrb[56].mxu0 }
 0x2d9   :  { %v1345_v14 = vmul.f32 3.5, %v1789_v57  ;;  %v1623_v51 = vpop.f32.mrb[57].mxu0 }
 0x2da   :  { %v1791_v47 = vpop.eup %1790  ;;  %v1624_v16 = vadd.f32 %v1623_v51, %v1622_v37  ;;  %v1625_v19 = vpop.f32.mrb[58].mxu0 }
 0x2db   :  { %v1377_v48 = vadd.f32 -1.5, %v1345_v14  ;;  %v1346_v54 = vmul.f32 3.5, %v1791_v47  ;;  %v1626_v22 = vpop.f32.mrb[59].mxu0 }
 0x2dc   :  { %v1227_v23 = vadd.f32 %v1624_v16, %v2269_v2  ;;  %v1627_v24 = vadd.f32 %v1626_v22, %v1625_v19 }
 0x2dd   :  { %v1414_v53 = vsel %vm2276_vm3, %v1377_v48, %v1211_v62  ;;  %v1378_v25 = vadd.f32 -1.5, %v1346_v54 }
 0x2de   :  { %1446 = vst [vmem:[#allocation5 + $0x40] sm:$0xff] %v1414_v53  ;;  %1796 = vtanh.f32 %v1227_v23  ;;  %v1230_v26 = vadd.f32 %v1627_v24, %v2269_v2 }
 0x2df   :  { %v1415_v52 = vsel %vm2276_vm3, %v1378_v25, %v1214_v3 }
 0x2e0   :  { %v1793_v55 = vpop.eup %1792  ;;  %1447 = vst [vmem:[#allocation5 + $0x48] sm:$0xff] %v1415_v52  ;;  %1798 = vtanh.f32 %v1230_v26  ;;  %v1628_v27 = vpop.f32.mrb[60].mxu0 }
 0x2e1   :  { %v1347_v28 = vmul.f32 3.5, %v1793_v55  ;;  %v1629_v29 = vpop.f32.mrb[61].mxu0 }
 0x2e2   :  { %v1795_v30 = vpop.eup %1794  ;;  %v1630_v31 = vadd.f32 %v1629_v29, %v1628_v27  ;;  %v1631_v32 = vpop.f32.mrb[62].mxu0 }
 0x2e3   :  { %v1379_v33 = vadd.f32 -1.5, %v1347_v28  ;;  %v1348_v34 = vmul.f32 3.5, %v1795_v30  ;;  %v1632_v35 = vpop.f32.mrb[63].mxu0 }
 0x2e4   :  { %v1235_v36 = vadd.f32 %v1630_v31, %v2269_v2  ;;  %v1633_v38 = vadd.f32 %v1632_v35, %v1631_v32 }
 0x2e5   :  { %v1416_v39 = vsel %vm2276_vm3, %v1379_v33, %v1219_v15  ;;  %v1380_v41 = vadd.f32 -1.5, %v1348_v34 }
 0x2e6   :  { %1448 = vst [vmem:[#allocation5 + $0x50] sm:$0xff] %v1416_v39  ;;  %1800 = vtanh.f32 %v1235_v36  ;;  %v1238_v42 = vadd.f32 %v1633_v38, %v2269_v2 }
 0x2e7   :  { %v1417_v43 = vsel %vm2276_vm3, %v1380_v41, %v1222_v21 }
 0x2e8   :  { %v1797_v45 = vpop.eup %1796  ;;  %1449 = vst [vmem:[#allocation5 + $0x58] sm:$0xff] %v1417_v43  ;;  %1802 = vtanh.f32 %v1238_v42  ;;  %v1634_v46 = vpop.f32.mrb[64].mxu0 }
 0x2e9   :  { %v1349_v49 = vmul.f32 3.5, %v1797_v45  ;;  %v1635_v50 = vpop.f32.mrb[65].mxu0 }
 0x2ea   :  { %v1799_v58 = vpop.eup %1798  ;;  %v1636_v59 = vadd.f32 %v1635_v50, %v1634_v46  ;;  %v1637_v60 = vpop.f32.mrb[66].mxu0 }
 0x2eb   :  { %v1381_v61 = vadd.f32 -1.5, %v1349_v49  ;;  %v1350_v62 = vmul.f32 3.5, %v1799_v58  ;;  %v1638_v63 = vpop.f32.mrb[67].mxu0 }
 0x2ec   :  { %v1243_v0 = vadd.f32 %v1636_v59, %v2269_v2  ;;  %v1639_v1 = vadd.f32 %v1638_v63, %v1637_v60 }
 0x2ed   :  { %v1418_v3 = vsel %vm2276_vm3, %v1381_v61, %v1227_v23  ;;  %v1382_v40 = vadd.f32 -1.5, %v1350_v62 }
 0x2ee   :  { %1450 = vst [vmem:[#allocation5 + $0x60] sm:$0xff] %v1418_v3  ;;  %1804 = vtanh.f32 %v1243_v0  ;;  %v1246_v4 = vadd.f32 %v1639_v1, %v2269_v2 }
 0x2ef   :  { %v1419_v5 = vsel %vm2276_vm3, %v1382_v40, %v1230_v26 }
 0x2f0   :  { %v1801_v11 = vpop.eup %1800  ;;  %1451 = vst [vmem:[#allocation5 + $0x68] sm:$0xff] %v1419_v5  ;;  %1806 = vtanh.f32 %v1246_v4  ;;  %v1640_v6 = vpop.f32.mrb[68].mxu0 }
 0x2f1   :  { %v1351_v7 = vmul.f32 3.5, %v1801_v11  ;;  %v1641_v8 = vpop.f32.mrb[69].mxu0 }
 0x2f2   :  { %v1803_v9 = vpop.eup %1802  ;;  %v1642_v10 = vadd.f32 %v1641_v8, %v1640_v6  ;;  %v1643_v12 = vpop.f32.mrb[70].mxu0 }
 0x2f3   :  { %v1383_v13 = vadd.f32 -1.5, %v1351_v7  ;;  %v1352_v15 = vmul.f32 3.5, %v1803_v9  ;;  %v1644_v17 = vpop.f32.mrb[71].mxu0 }
 0x2f4   :  { %v1251_v18 = vadd.f32 %v1642_v10, %v2269_v2  ;;  %v1645_v20 = vadd.f32 %v1644_v17, %v1643_v12 }
 0x2f5   :  { %v1420_v21 = vsel %vm2276_vm3, %v1383_v13, %v1235_v36  ;;  %v1384_v56 = vadd.f32 -1.5, %v1352_v15 }
 0x2f6   :  { %1452 = vst [vmem:[#allocation5 + $0x70] sm:$0xff] %v1420_v21  ;;  %1808 = vtanh.f32 %v1251_v18  ;;  %v1254_v57 = vadd.f32 %v1645_v20, %v2269_v2 }
 0x2f7   :  { %v1421_v37 = vsel %vm2276_vm3, %v1384_v56, %v1238_v42 }
 0x2f8   :  { %v1805_v14 = vpop.eup %1804  ;;  %1453 = vst [vmem:[#allocation5 + $0x78] sm:$0xff] %v1421_v37  ;;  %1810 = vtanh.f32 %v1254_v57  ;;  %v1646_v51 = vpop.f32.mrb[72].mxu0 }
 0x2f9   :  { %v1353_v47 = vmul.f32 3.5, %v1805_v14  ;;  %v1647_v16 = vpop.f32.mrb[73].mxu0 }
 0x2fa   :  { %v1807_v19 = vpop.eup %1806  ;;  %v1648_v48 = vadd.f32 %v1647_v16, %v1646_v51  ;;  %v1649_v54 = vpop.f32.mrb[74].mxu0 }
 0x2fb   :  { %v1385_v22 = vadd.f32 -1.5, %v1353_v47  ;;  %v1354_v23 = vmul.f32 3.5, %v1807_v19  ;;  %v1650_v24 = vpop.f32.mrb[75].mxu0 }
 0x2fc   :  { %v1259_v53 = vadd.f32 %v1648_v48, %v2269_v2  ;;  %v1651_v25 = vadd.f32 %v1650_v24, %v1649_v54 }
 0x2fd   :  { %v1422_v26 = vsel %vm2276_vm3, %v1385_v22, %v1243_v0  ;;  %v1386_v52 = vadd.f32 -1.5, %v1354_v23 }
 0x2fe   :  { %1454 = vst [vmem:[#allocation5 + $0x80] sm:$0xff] %v1422_v26  ;;  %1812 = vtanh.f32 %v1259_v53  ;;  %v1262_v55 = vadd.f32 %v1651_v25, %v2269_v2 }
 0x2ff   :  { %v1423_v27 = vsel %vm2276_vm3, %v1386_v52, %v1246_v4 }
 0x300   :  { %v1809_v28 = vpop.eup %1808  ;;  %1455 = vst [vmem:[#allocation5 + $0x88] sm:$0xff] %v1423_v27  ;;  %1814 = vtanh.f32 %v1262_v55  ;;  %v1652_v29 = vpop.f32.mrb[76].mxu0 }
 0x301   :  { %v1355_v30 = vmul.f32 3.5, %v1809_v28  ;;  %v1653_v31 = vpop.f32.mrb[77].mxu0 }
 0x302   :  { %v1811_v32 = vpop.eup %1810  ;;  %v1654_v33 = vadd.f32 %v1653_v31, %v1652_v29  ;;  %v1655_v34 = vpop.f32.mrb[78].mxu0 }
 0x303   :  { %v1387_v35 = vadd.f32 -1.5, %v1355_v30  ;;  %v1356_v36 = vmul.f32 3.5, %v1811_v32  ;;  %v1656_v38 = vpop.f32.mrb[79].mxu0 }
 0x304   :  { %v1267_v39 = vadd.f32 %v1654_v33, %v2269_v2  ;;  %v1657_v41 = vadd.f32 %v1656_v38, %v1655_v34 }
 0x305   :  { %v1424_v42 = vsel %vm2276_vm3, %v1387_v35, %v1251_v18  ;;  %v1388_v43 = vadd.f32 -1.5, %v1356_v36 }
 0x306   :  { %1456 = vst [vmem:[#allocation5 + $0x90] sm:$0xff] %v1424_v42  ;;  %1816 = vtanh.f32 %v1267_v39  ;;  %v1270_v45 = vadd.f32 %v1657_v41, %v2269_v2 }
 0x307   :  { %v1425_v46 = vsel %vm2276_vm3, %v1388_v43, %v1254_v57 }
 0x308   :  { %v1813_v49 = vpop.eup %1812  ;;  %1457 = vst [vmem:[#allocation5 + $0x98] sm:$0xff] %v1425_v46  ;;  %1818 = vtanh.f32 %v1270_v45  ;;  %v1658_v50 = vpop.f32.mrb[80].mxu0 }
 0x309   :  { %v1357_v58 = vmul.f32 3.5, %v1813_v49  ;;  %v1659_v59 = vpop.f32.mrb[81].mxu0 }
 0x30a   :  { %v1815_v60 = vpop.eup %1814  ;;  %v1660_v61 = vadd.f32 %v1659_v59, %v1658_v50  ;;  %v1661_v62 = vpop.f32.mrb[82].mxu0 }
 0x30b   :  { %v1389_v63 = vadd.f32 -1.5, %v1357_v58  ;;  %v1358_v0 = vmul.f32 3.5, %v1815_v60  ;;  %v1662_v1 = vpop.f32.mrb[83].mxu0 }
 0x30c   :  { %v1275_v3 = vadd.f32 %v1660_v61, %v2269_v2  ;;  %v1663_v40 = vadd.f32 %v1662_v1, %v1661_v62 }
 0x30d   :  { %v1426_v4 = vsel %vm2276_vm3, %v1389_v63, %v1259_v53  ;;  %v1390_v5 = vadd.f32 -1.5, %v1358_v0 }
 0x30e   :  { %1458 = vst [vmem:[#allocation5 + $0xa0] sm:$0xff] %v1426_v4  ;;  %1820 = vtanh.f32 %v1275_v3  ;;  %v1278_v11 = vadd.f32 %v1663_v40, %v2269_v2 }
 0x30f   :  { %v1427_v6 = vsel %vm2276_vm3, %v1390_v5, %v1262_v55 }
 0x310   :  { %v1817_v7 = vpop.eup %1816  ;;  %1459 = vst [vmem:[#allocation5 + $0xa8] sm:$0xff] %v1427_v6  ;;  %1822 = vtanh.f32 %v1278_v11  ;;  %v1664_v8 = vpop.f32.mrb[84].mxu0 }
 0x311   :  { %v1359_v9 = vmul.f32 3.5, %v1817_v7  ;;  %v1665_v10 = vpop.f32.mrb[85].mxu0 }
 0x312   :  { %v1819_v12 = vpop.eup %1818  ;;  %v1666_v13 = vadd.f32 %v1665_v10, %v1664_v8  ;;  %v1667_v15 = vpop.f32.mrb[86].mxu0 }
 0x313   :  { %v1391_v17 = vadd.f32 -1.5, %v1359_v9  ;;  %v1360_v18 = vmul.f32 3.5, %v1819_v12  ;;  %v1668_v20 = vpop.f32.mrb[87].mxu0 }
 0x314   :  { %v1283_v21 = vadd.f32 %v1666_v13, %v2269_v2  ;;  %v1669_v56 = vadd.f32 %v1668_v20, %v1667_v15 }
 0x315   :  { %v1428_v57 = vsel %vm2276_vm3, %v1391_v17, %v1267_v39  ;;  %v1392_v37 = vadd.f32 -1.5, %v1360_v18 }
 0x316   :  { %1460 = vst [vmem:[#allocation5 + $0xb0] sm:$0xff] %v1428_v57  ;;  %1824 = vtanh.f32 %v1283_v21  ;;  %v1286_v14 = vadd.f32 %v1669_v56, %v2269_v2 }
 0x317   :  { %v1429_v51 = vsel %vm2276_vm3, %v1392_v37, %v1270_v45 }
 0x318   :  { %v1821_v47 = vpop.eup %1820  ;;  %1461 = vst [vmem:[#allocation5 + $0xb8] sm:$0xff] %v1429_v51  ;;  %1826 = vtanh.f32 %v1286_v14  ;;  %v1670_v16 = vpop.f32.mrb[88].mxu0 }
 0x319   :  { %v1361_v19 = vmul.f32 3.5, %v1821_v47  ;;  %v1671_v48 = vpop.f32.mrb[89].mxu0 }
 0x31a   :  { %v1823_v54 = vpop.eup %1822  ;;  %v1672_v22 = vadd.f32 %v1671_v48, %v1670_v16  ;;  %v1673_v23 = vpop.f32.mrb[90].mxu0 }
 0x31b   :  { %v1393_v24 = vadd.f32 -1.5, %v1361_v19  ;;  %v1362_v53 = vmul.f32 3.5, %v1823_v54  ;;  %v1674_v25 = vpop.f32.mrb[91].mxu0 }
 0x31c   :  { %v1291_v26 = vadd.f32 %v1672_v22, %v2269_v2  ;;  %v1675_v52 = vadd.f32 %v1674_v25, %v1673_v23 }
 0x31d   :  { %v1430_v55 = vsel %vm2276_vm3, %v1393_v24, %v1275_v3  ;;  %v1394_v27 = vadd.f32 -1.5, %v1362_v53 }
 0x31e   :  { %1462 = vst [vmem:[#allocation5 + $0xc0] sm:$0xff] %v1430_v55  ;;  %1828 = vtanh.f32 %v1291_v26  ;;  %v1294_v28 = vadd.f32 %v1675_v52, %v2269_v2 }
 0x31f   :  { %v1431_v29 = vsel %vm2276_vm3, %v1394_v27, %v1278_v11 }
 0x320   :  { %v1825_v30 = vpop.eup %1824  ;;  %1463 = vst [vmem:[#allocation5 + $0xc8] sm:$0xff] %v1431_v29  ;;  %1830 = vtanh.f32 %v1294_v28  ;;  %v1676_v31 = vpop.f32.mrb[92].mxu0 }
 0x321   :  { %v1363_v32 = vmul.f32 3.5, %v1825_v30  ;;  %v1677_v33 = vpop.f32.mrb[93].mxu0 }
 0x322   :  { %v1827_v34 = vpop.eup %1826  ;;  %v1678_v35 = vadd.f32 %v1677_v33, %v1676_v31  ;;  %v1679_v36 = vpop.f32.mrb[94].mxu0 }
 0x323   :  { %v1395_v38 = vadd.f32 -1.5, %v1363_v32  ;;  %v1364_v39 = vmul.f32 3.5, %v1827_v34  ;;  %v1680_v41 = vpop.f32.mrb[95].mxu0 }
 0x324   :  { %v1299_v42 = vadd.f32 %v1678_v35, %v2269_v2  ;;  %v1681_v43 = vadd.f32 %v1680_v41, %v1679_v36 }
 0x325   :  { %v1432_v45 = vsel %vm2276_vm3, %v1395_v38, %v1283_v21  ;;  %v1396_v46 = vadd.f32 -1.5, %v1364_v39 }
 0x326   :  { %1464 = vst [vmem:[#allocation5 + $0xd0] sm:$0xff] %v1432_v45  ;;  %1832 = vtanh.f32 %v1299_v42  ;;  %v1302_v49 = vadd.f32 %v1681_v43, %v2269_v2 }
 0x327   :  { %v1433_v50 = vsel %vm2276_vm3, %v1396_v46, %v1286_v14 }
 0x328   :  { %v1829_v58 = vpop.eup %1828  ;;  %1465 = vst [vmem:[#allocation5 + $0xd8] sm:$0xff] %v1433_v50  ;;  %1834 = vtanh.f32 %v1302_v49 }
 0x329   :  { %v1365_v59 = vmul.f32 3.5, %v1829_v58 }
 0x32a   :  { %v1831_v60 = vpop.eup %1830 }
 0x32b   :  { %v1397_v61 = vadd.f32 -1.5, %v1365_v59  ;;  %v1366_v62 = vmul.f32 3.5, %v1831_v60 }
 0x32d   :  { %v1434_v63 = vsel %vm2276_vm3, %v1397_v61, %v1291_v26  ;;  %v1398_v0 = vadd.f32 -1.5, %v1366_v62 }
 0x32e   :  { %1466 = vst [vmem:[#allocation5 + $0xe0] sm:$0xff] %v1434_v63 }
 0x32f   :  { %v1435_v1 = vsel %vm2276_vm3, %v1398_v0, %v1294_v28 }
 0x330   :  { %v1833_v3 = vpop.eup %1832  ;;  %1467 = vst [vmem:[#allocation5 + $0xe8] sm:$0xff] %v1435_v1 }
 0x331   :  { %v1367_v2 = vmul.f32 3.5, %v1833_v3 }
 0x332   :  { %v1835_v40 = vpop.eup %1834 }
 0x333   :  { %v1399_v4 = vadd.f32 -1.5, %v1367_v2  ;;  %v1368_v5 = vmul.f32 3.5, %v1835_v40 }
 0x335   :  { %v1436_v11 = vsel %vm2276_vm3, %v1399_v4, %v1299_v42  ;;  %v1400_v6 = vadd.f32 -1.5, %v1368_v5 }
 0x336   :  { %1468 = vst [vmem:[#allocation5 + $0xf0] sm:$0xff] %v1436_v11 }
 0x337   :  { %v1437_v7 = vsel %vm2276_vm3, %v1400_v6, %v1302_v49 }
 0x338   :  { %1469 = vst [vmem:[#allocation5 + $0xf8] sm:$0xff] %v1437_v7 }
 0x339   :  { %1869 = shalt.err (!%p1866_p12)
}
 0x33a   :  { %s1870_s18 = scalar_lea.hbm %s2394_s7, 4096 }
 0x33b   :  { %p1871_p13 = scmp.ne.s32.totalorder %s2394_s7, %s1870_s18  ;;  %p1874_p0 = scmp.lt.u32.totalorder %s1870_s18, %s2394_s7 }
 0x33d   :  { %p1876_p1 = pnand %p1874_p0, %p1871_p13 }
 0x33f   :  { %1879 = shalt.err (!%p1876_p1)
}
 0x340   :  { %1481 = dma.vmem_to_hbm [thread:$0]  %s1476_s14, 4096, %s2394_s7, [#allocation4], %s1885_s11, %s1885_s11, %s1886_s12  }
 0x341   :  { %1882 = dma.done.wait [#allocation4], 4096  }
 0x342   :  { %1883 = vsyncadd [#allocation4], 4294963200 }
 0x343   :  { %1485 = vsyncpa [#allocation3], 1 }
 0x344   :  { %1486 = vsyncpa [#allocation4], 1 }

</bundles_post_ra>
